<compile_context>
chip_gen: v7x
topology: tpu7x:2x2x1
jax: 0.10.0
libtpu: 0.0.40
codegen_flags: <defaults>
</compile_context>

<pallas_src>
import functools

import jax
import jax.numpy as jnp
from jax.experimental import pallas as pl
from jax.experimental.pallas import tpu as pltpu


_LANE = 128
_EPS = 1e-5
_SLOPE = 0.2


# ----------------------------- Pallas kernel -------------------------------

def _fused_block_kernel(xs_ref, w_ref, o_ref, acc_ref, *, keff, oh, ow):
    """One (batch block, channel tile): shifted-slab conv + IN + LeakyReLU.

    xs_ref : (n_blk, oh+keff-1, wk, ceff)  bf16  padded (+s2d) input slab
    w_ref  : (keff, keff, ceff, tn)        bf16  rearranged HWIO weights
    o_ref  : (n_blk, oh*ow, tn)            out   normalized + activated output
    acc_ref: (n_blk*oh*wk, tn)             f32   VMEM scratch accumulator
    """
    n_blk, _, wk, _ = xs_ref.shape
    tn = o_ref.shape[-1]
    m_acc = n_blk * oh * wk

    # Conv as keff slab GEMMs; the kernel-column shift is a roll of the
    # (M, tn) partial (XLU), not a strided window copy of width ceff.  Rolled
    # garbage only lands in the >=ow pad columns, which are masked out below.
    first = True
    for i in range(keff):
        slab = xs_ref[:, i:i + oh, :, :].reshape(m_acc, -1)
        for j in range(keff):
            part = jnp.dot(slab, w_ref[i, j, :, :],
                           preferred_element_type=jnp.float32)
            if j:
                part = pltpu.roll(part, shift=m_acc - j, axis=0)
            if first:
                acc_ref[...] = part
                first = False
            else:
                acc_ref[...] += part

    # InstanceNorm2d(affine=False, eps=1e-5): single-pass biased variance over
    # the valid spatial positions of each sample (E[x^2] - mean^2).
    a = acc_ref[...].reshape(n_blk, oh, wk, tn)[:, :, :ow, :]
    a = a.reshape(n_blk, oh * ow, tn)
    inv_m = 1.0 / float(oh * ow)
    mean = jnp.sum(a, axis=1, keepdims=True) * inv_m
    var = jnp.sum(a * a, axis=1, keepdims=True) * inv_m - mean * mean
    y = (a - mean) * jax.lax.rsqrt(jnp.maximum(var, 0.0) + _EPS)
    y = jnp.where(y > 0, y, _SLOPE * y)                       # LeakyReLU(0.2)
    o_ref[...] = y.astype(o_ref.dtype)


# ----------------------------- JAX wrapper ----------------------------------

def _round_up(x, m):
    return -(-x // m) * m


def _device_kind():
    try:
        return jax.devices()[0].device_kind.lower()
    except Exception:  # pragma: no cover - defensive
        return ""


@functools.partial(jax.jit, static_argnames=("stride", "out_dtype", "nhwc_out"))
def basic_block_forward(x_nchw, w_oihw, bias=None, *, stride, out_dtype=None,
                        nhwc_out=False):
    """Forward of BasicBlock(in_ch, out_ch, stride).  NCHW in / NCHW out.

    `bias` is accepted for parameter parity with the PyTorch module but is not
    used: InstanceNorm2d(affine=False) subtracts the per-channel mean, which
    removes any constant per-channel shift exactly.
    """
    del bias
    if stride not in (1, 2):
        raise ValueError("stride must be 1 or 2")
    n, cin, h, w = x_nchw.shape
    cout = w_oihw.shape[0]
    if out_dtype is None:
        out_dtype = x_nchw.dtype

    oh = (h + 2 - 4) // stride + 1
    ow = (w + 2 - 4) // stride + 1

    # NCHW -> NHWC, reflect pad 1 (cheap layout ops; no im2col blow-up).
    x = jnp.transpose(x_nchw, (0, 2, 3, 1))
    xp = jnp.pad(x, ((0, 0), (1, 1), (1, 1), (0, 0)), mode="reflect")
    w_hwio = jnp.transpose(w_oihw, (2, 3, 1, 0))

    if stride == 2:
        # Space-to-depth by 2: 4x4/s2 conv == 2x2/s1 conv over 4*cin channels.
        keff, ceff = 2, 4 * cin
        xs = xp[:, :2 * (oh + 1), :2 * (ow + 1), :]
        xs = xs.reshape(n, oh + 1, 2, ow + 1, 2, cin)
        xs = xs.transpose(0, 1, 3, 2, 4, 5).reshape(n, oh + 1, ow + 1, ceff)
        we = w_hwio.reshape(2, 2, 2, 2, cin, cout)
        we = we.transpose(0, 2, 1, 3, 4, 5).reshape(2, 2, ceff, cout)
    else:  # stride == 1
        keff, ceff = 4, cin
        xs = xp[:, :oh + 3, :ow + 3, :]
        we = w_hwio

    hs = oh + keff - 1
    # Pad slab width to a sublane multiple: in-kernel reshapes stay
    # tile-aligned; extra columns are dead and masked out of the IN stats.
    wk = _round_up(ow + keff - 1, 8)
    if wk > xs.shape[2]:
        xs = jnp.pad(xs, ((0, 0), (0, 0), (0, wk - xs.shape[2]), (0, 0)))

    # Lane-dense output channels -> unmasked stores.
    cout_p = _round_up(cout, _LANE)
    if cout_p != cout:
        we = jnp.pad(we, ((0, 0), (0, 0), (0, 0), (0, cout_p - cout)))

    kind = _device_kind()
    is_v5e = ("v5e" in kind) or ("v5 lite" in kind) or ("v5litepod" in kind)
    vmem_cap = (128 << 20) if (("v5" in kind) or ("v6" in kind)) else (64 << 20)

    # 256-wide channel tiles fill the 256-wide MXU on v6e/v7x; keep 128 on v5e.
    tn = 256 if (cout_p % 256 == 0 and not is_v5e) else _LANE

    out_bytes = jnp.dtype(out_dtype).itemsize
    # Per-grid-step VMEM: double-buffered in/out blocks + f32 accumulator +
    # epilogue temporaries.
    xs_s = hs * wk * ceff * 2
    out_s = oh * ow * tn * out_bytes
    acc_s = oh * wk * tn * 4
    per_sample = 2 * xs_s + 2 * out_s + acc_s + 2 * oh * ow * tn * 4
    fixed = 2 * keff * keff * ceff * tn * 2 + (2 << 20)

    # Fold samples into the GEMM M dimension so small feature maps still fill
    # the MXU and amortize per-grid-step overhead.
    n_blk = 1
    for cand in range(1, n + 1):
        if n % cand:
            continue
        if fixed + cand * per_sample > vmem_cap // 2:
            break
        n_blk = cand
        if cand * oh * ow >= 1024:
            break

    est = fixed + n_blk * per_sample
    vmem_limit = None
    if est > (30 << 20):
        # TODO(synk): if `est` exceeds physical VMEM (very large spatial maps),
        # tile the spatial axis with sum/sumsq side outputs + apply pass.
        vmem_limit = int(min(est * 5 // 4, vmem_cap - (8 << 20)))

    xs = xs.astype(jnp.bfloat16)          # bf16 MXU inputs, f32 accumulation
    we = we.astype(jnp.bfloat16)

    # Channel-tile axis innermost: the (large) xs block index is unchanged
    # across consecutive steps, so its DMA is skipped (revisit).
    grid = (n // n_blk, cout_p // tn)
    kernel = functools.partial(_fused_block_kernel, keff=keff, oh=oh, ow=ow)

    flops = 2 * n * oh * ow * keff * keff * ceff * cout_p
    bytes_accessed = (xs.size * 2 + (n // n_blk) * we.size * 2
                      + n * oh * ow * cout_p * out_bytes)

    out = pl.pallas_call(
        kernel,
        out_shape=jax.ShapeDtypeStruct((n, oh * ow, cout_p), out_dtype),
        grid=grid,
        in_specs=[
            pl.BlockSpec((n_blk, hs, wk, ceff), lambda i, j: (i, 0, 0, 0)),
            pl.BlockSpec((keff, keff, ceff, tn), lambda i, j: (0, 0, 0, j)),
        ],
        out_specs=pl.BlockSpec((n_blk, oh * ow, tn), lambda i, j: (i, 0, j)),
        scratch_shapes=[pltpu.VMEM((n_blk * oh * wk, tn), jnp.float32)],
        compiler_params=pltpu.CompilerParams(
            dimension_semantics=("parallel", "parallel"),
            vmem_limit_bytes=vmem_limit),
        cost_estimate=pl.CostEstimate(
            flops=flops, transcendentals=n * cout_p,
            bytes_accessed=bytes_accessed),
    )(xs, we)

    out = out[:, :, :cout].reshape(n, oh, ow, cout)
    if nhwc_out:
        return out                         # keep NHWC for a following block
    return jnp.transpose(out, (0, 3, 1, 2))                  # NHWC -> NCHW


# ----------------------------- reference (f32) ------------------------------

def _reference_forward(x_nchw, w_oihw, bias, stride):
    xp = jnp.pad(x_nchw, ((0, 0), (0, 0), (1, 1), (1, 1)), mode="reflect")
    y = jax.lax.conv_general_dilated(
        xp, w_oihw, window_strides=(stride, stride), padding="VALID",
        dimension_numbers=("NCHW", "OIHW", "NCHW"))
    y = y + bias[None, :, None, None]
    mean = jnp.mean(y, axis=(2, 3), keepdims=True)
    var = jnp.mean(jnp.square(y - mean), axis=(2, 3), keepdims=True)
    y = (y - mean) * jax.lax.rsqrt(var + _EPS)
    return jnp.where(y > 0, y, _SLOPE * y)


# ----------------------------------- main -----------------------------------

if __name__ == "__main__":
    # --- BasicBlock(64, 128, stride=2) on a 16x16 input (bf16 output path) ---
    kx, kw, kb = jax.random.split(jax.random.PRNGKey(0), 3)
    N, CIN, H, W, COUT, STRIDE = 2, 64, 16, 16, 128, 2
    x = jax.random.normal(kx, (N, CIN, H, W), jnp.float32)
    wgt = jax.random.normal(kw, (COUT, CIN, 4, 4), jnp.float32) / jnp.sqrt(
        jnp.float32(CIN * 16))
    b = 0.1 * jax.random.normal(kb, (COUT,), jnp.float32)

    out = jax.block_until_ready(
        basic_block_forward(x, wgt, b, stride=STRIDE, out_dtype=jnp.bfloat16))
    assert out.shape == (N, COUT, H // 2, W // 2), out.shape
    out_f32 = out.astype(jnp.float32)
    assert bool(jnp.all(jnp.isfinite(out_f32)))
    ref = _reference_forward(x, wgt, b, STRIDE)
    err = float(jnp.max(jnp.abs(out_f32 - ref)))
    assert err < 0.1, f"stride-2 max abs err vs f32 reference: {err}"

    # --- BasicBlock(32, 96, stride=1) on a 9x9 input (keff=4, padded Cout) ---
    kx, kw, kb = jax.random.split(jax.random.PRNGKey(1), 3)
    N, CIN, H, W, COUT, STRIDE = 2, 32, 9, 9, 96, 1
    x = jax.random.normal(kx, (N, CIN, H, W), jnp.float32)
    wgt = jax.random.normal(kw, (COUT, CIN, 4, 4), jnp.float32) / jnp.sqrt(
        jnp.float32(CIN * 16))
    b = 0.1 * jax.random.normal(kb, (COUT,), jnp.float32)

    out = jax.block_until_ready(basic_block_forward(x, wgt, b, stride=STRIDE))
    assert out.shape == (N, COUT, H - 1, W - 1), out.shape
    assert bool(jnp.all(jnp.isfinite(out)))
    ref = _reference_forward(x, wgt, b, STRIDE)
    err = float(jnp.max(jnp.abs(out - ref)))
    assert err < 0.1, f"stride-1 max abs err vs f32 reference: {err}"

    print("KERNEL_OK")
</pallas_src>

<mosaic_0001>
module attributes {stable_mosaic.version = 11 : i64} {
  func.func @_fused_block_kernel(%arg0: i32, %arg1: i32, %arg2: memref<2x9x16x256xbf16, #tpu.memory_space<vmem>>, %arg3: memref<2x2x256x128xbf16, #tpu.memory_space<vmem>>, %arg4: memref<2x64x128xbf16, #tpu.memory_space<vmem>>, %arg5: memref<256x128xf32, #tpu.memory_space<vmem>>) attributes {dimension_semantics = [#tpu.dimension_semantics<parallel>, #tpu.dimension_semantics<parallel>], iteration_bounds = array<i64: 1, 1>, scalar_prefetch = 0 : i64, scratch_operands = 1 : i64, tpu.core_type = #tpu.core_type<tc>, window_params = [{transform_indices = @transform_0, window_bounds = array<i64: 2, 9, 16, 256>}, {transform_indices = @transform_1, window_bounds = array<i64: 2, 2, 256, 128>}, {transform_indices = @transform_2, window_bounds = array<i64: 2, 64, 128>}]} {
    %c0 = arith.constant 0 : index
    %c0_0 = arith.constant 0 : index
    %c0_1 = arith.constant 0 : index
    %c0_2 = arith.constant 0 : index
    %0 = vector.load %arg2[%c0, %c0_0, %c0_1, %c0_2] : memref<2x9x16x256xbf16, #tpu.memory_space<vmem>>, vector<2x8x16x256xbf16>
    %1 = vector.shape_cast %0 : vector<2x8x16x256xbf16> to vector<256x256xbf16>
    %c0_3 = arith.constant 0 : index
    %c0_4 = arith.constant 0 : index
    %c0_5 = arith.constant 0 : index
    %c0_6 = arith.constant 0 : index
    %2 = vector.load %arg3[%c0_3, %c0_4, %c0_5, %c0_6] : memref<2x2x256x128xbf16, #tpu.memory_space<vmem>>, vector<1x1x256x128xbf16>
    %3 = vector.shape_cast %2 : vector<1x1x256x128xbf16> to vector<256x128xbf16>
    %cst = arith.constant dense<0.000000e+00> : vector<256x128xf32>
    %4 = tpu.matmul %1, %3, %cst {dimension_numbers = #tpu.dot_dimension_numbers<[1], [0], [0], [1], [0, 0, 1, 1], [], []>} : vector<256x256xbf16>, vector<256x128xbf16>, vector<256x128xf32> -> vector<256x128xf32>
    %c0_7 = arith.constant 0 : index
    %c0_8 = arith.constant 0 : index
    %5 = vector.load %arg5[%c0_7, %c0_8] : memref<256x128xf32, #tpu.memory_space<vmem>>, vector<256x128xf32>
    tpu.vector_store %arg5[%c0_7, %c0_8], %4 {strides = array<i32>} : memref<256x128xf32, #tpu.memory_space<vmem>>, vector<256x128xf32>,
    %c0_9 = arith.constant 0 : index
    %c1 = arith.constant 1 : index
    %c0_10 = arith.constant 0 : index
    %c0_11 = arith.constant 0 : index
    %6 = vector.load %arg3[%c0_9, %c1, %c0_10, %c0_11] : memref<2x2x256x128xbf16, #tpu.memory_space<vmem>>, vector<1x1x256x128xbf16>
    %7 = vector.shape_cast %6 : vector<1x1x256x128xbf16> to vector<256x128xbf16>
    %cst_12 = arith.constant dense<0.000000e+00> : vector<256x128xf32>
    %8 = tpu.matmul %1, %7, %cst_12 {dimension_numbers = #tpu.dot_dimension_numbers<[1], [0], [0], [1], [0, 0, 1, 1], [], []>} : vector<256x256xbf16>, vector<256x128xbf16>, vector<256x128xf32> -> vector<256x128xf32>
    %c255_i32 = arith.constant 255 : i32
    %9 = tpu.dynamic_rotate %8 by %c255_i32 dim 0 : vector<256x128xf32>, i32 -> vector<256x128xf32>
    %c0_13 = arith.constant 0 : index
    %c0_14 = arith.constant 0 : index
    %10 = vector.load %arg5[%c0_13, %c0_14] : memref<256x128xf32, #tpu.memory_space<vmem>>, vector<256x128xf32>
    %11 = arith.addf %10, %9 : vector<256x128xf32>
    %c0_15 = arith.constant 0 : index
    %c0_16 = arith.constant 0 : index
    %12 = vector.load %arg5[%c0_15, %c0_16] : memref<256x128xf32, #tpu.memory_space<vmem>>, vector<256x128xf32>
    tpu.vector_store %arg5[%c0_15, %c0_16], %11 {strides = array<i32>} : memref<256x128xf32, #tpu.memory_space<vmem>>, vector<256x128xf32>,
    %c0_17 = arith.constant 0 : index
    %c1_18 = arith.constant 1 : index
    %c0_19 = arith.constant 0 : index
    %c0_20 = arith.constant 0 : index
    %13 = vector.load %arg2[%c0_17, %c1_18, %c0_19, %c0_20] : memref<2x9x16x256xbf16, #tpu.memory_space<vmem>>, vector<2x8x16x256xbf16>
    %14 = vector.shape_cast %13 : vector<2x8x16x256xbf16> to vector<256x256xbf16>
    %c1_21 = arith.constant 1 : index
    %c0_22 = arith.constant 0 : index
    %c0_23 = arith.constant 0 : index
    %c0_24 = arith.constant 0 : index
    %15 = vector.load %arg3[%c1_21, %c0_22, %c0_23, %c0_24] : memref<2x2x256x128xbf16, #tpu.memory_space<vmem>>, vector<1x1x256x128xbf16>
    %16 = vector.shape_cast %15 : vector<1x1x256x128xbf16> to vector<256x128xbf16>
    %cst_25 = arith.constant dense<0.000000e+00> : vector<256x128xf32>
    %17 = tpu.matmul %14, %16, %cst_25 {dimension_numbers = #tpu.dot_dimension_numbers<[1], [0], [0], [1], [0, 0, 1, 1], [], []>} : vector<256x256xbf16>, vector<256x128xbf16>, vector<256x128xf32> -> vector<256x128xf32>
    %c0_26 = arith.constant 0 : index
    %c0_27 = arith.constant 0 : index
    %18 = vector.load %arg5[%c0_26, %c0_27] : memref<256x128xf32, #tpu.memory_space<vmem>>, vector<256x128xf32>
    %19 = arith.addf %18, %17 : vector<256x128xf32>
    %c0_28 = arith.constant 0 : index
    %c0_29 = arith.constant 0 : index
    %20 = vector.load %arg5[%c0_28, %c0_29] : memref<256x128xf32, #tpu.memory_space<vmem>>, vector<256x128xf32>
    tpu.vector_store %arg5[%c0_28, %c0_29], %19 {strides = array<i32>} : memref<256x128xf32, #tpu.memory_space<vmem>>, vector<256x128xf32>,
    %c1_30 = arith.constant 1 : index
    %c1_31 = arith.constant 1 : index
    %c0_32 = arith.constant 0 : index
    %c0_33 = arith.constant 0 : index
    %21 = vector.load %arg3[%c1_30, %c1_31, %c0_32, %c0_33] : memref<2x2x256x128xbf16, #tpu.memory_space<vmem>>, vector<1x1x256x128xbf16>
    %22 = vector.shape_cast %21 : vector<1x1x256x128xbf16> to vector<256x128xbf16>
    %cst_34 = arith.constant dense<0.000000e+00> : vector<256x128xf32>
    %23 = tpu.matmul %14, %22, %cst_34 {dimension_numbers = #tpu.dot_dimension_numbers<[1], [0], [0], [1], [0, 0, 1, 1], [], []>} : vector<256x256xbf16>, vector<256x128xbf16>, vector<256x128xf32> -> vector<256x128xf32>
    %c255_i32_35 = arith.constant 255 : i32
    %24 = tpu.dynamic_rotate %23 by %c255_i32_35 dim 0 : vector<256x128xf32>, i32 -> vector<256x128xf32>
    %c0_36 = arith.constant 0 : index
    %c0_37 = arith.constant 0 : index
    %25 = vector.load %arg5[%c0_36, %c0_37] : memref<256x128xf32, #tpu.memory_space<vmem>>, vector<256x128xf32>
    %26 = arith.addf %25, %24 : vector<256x128xf32>
    %c0_38 = arith.constant 0 : index
    %c0_39 = arith.constant 0 : index
    %27 = vector.load %arg5[%c0_38, %c0_39] : memref<256x128xf32, #tpu.memory_space<vmem>>, vector<256x128xf32>
    tpu.vector_store %arg5[%c0_38, %c0_39], %26 {strides = array<i32>} : memref<256x128xf32, #tpu.memory_space<vmem>>, vector<256x128xf32>,
    %c0_40 = arith.constant 0 : index
    %c0_41 = arith.constant 0 : index
    %28 = vector.load %arg5[%c0_40, %c0_41] : memref<256x128xf32, #tpu.memory_space<vmem>>, vector<256x128xf32>
    %29 = vector.shape_cast %28 : vector<256x128xf32> to vector<2x8x16x128xf32>
    %30 = vector.extract_strided_slice %29 {offsets = [0, 0, 0, 0], sizes = [2, 8, 8, 128], strides = [1, 1, 1, 1]} : vector<2x8x16x128xf32> to vector<2x8x8x128xf32>
    %31 = vector.shape_cast %30 : vector<2x8x8x128xf32> to vector<2x64x128xf32>
    %cst_42 = arith.constant dense<0.000000e+00> : vector<2x128xf32>
    %32 = vector.multi_reduction <add>, %31, %cst_42 [1] : vector<2x64x128xf32> to vector<2x128xf32>
    %33 = vector.shape_cast %32 : vector<2x128xf32> to vector<2x1x128xf32>
    %cst_43 = arith.constant 1.562500e-02 : f32
    %34 = vector.broadcast %cst_43 : f32 to vector<2x1x128xf32>
    %35 = arith.mulf %33, %34 : vector<2x1x128xf32>
    %36 = arith.mulf %31, %31 : vector<2x64x128xf32>
    %cst_44 = arith.constant dense<0.000000e+00> : vector<2x128xf32>
    %37 = vector.multi_reduction <add>, %36, %cst_44 [1] : vector<2x64x128xf32> to vector<2x128xf32>
    %38 = vector.shape_cast %37 : vector<2x128xf32> to vector<2x1x128xf32>
    %cst_45 = arith.constant 1.562500e-02 : f32
    %39 = vector.broadcast %cst_45 : f32 to vector<2x1x128xf32>
    %40 = arith.mulf %38, %39 : vector<2x1x128xf32>
    %41 = arith.mulf %35, %35 : vector<2x1x128xf32>
    %42 = arith.subf %40, %41 : vector<2x1x128xf32>
    %43 = vector.broadcast %35 : vector<2x1x128xf32> to vector<2x64x128xf32>
    %44 = arith.subf %31, %43 : vector<2x64x128xf32>
    %cst_46 = arith.constant 0.000000e+00 : f32
    %45 = vector.broadcast %cst_46 : f32 to vector<2x1x128xf32>
    %46 = arith.maximumf %42, %45 : vector<2x1x128xf32>
    %cst_47 = arith.constant 9.99999974E-6 : f32
    %47 = vector.broadcast %cst_47 : f32 to vector<2x1x128xf32>
    %48 = arith.addf %46, %47 : vector<2x1x128xf32>
    %49 = math.rsqrt %48 : vector<2x1x128xf32>
    %50 = vector.broadcast %49 : vector<2x1x128xf32> to vector<2x64x128xf32>
    %51 = arith.mulf %44, %50 : vector<2x64x128xf32>
    %cst_48 = arith.constant 0.000000e+00 : f32
    %52 = vector.broadcast %cst_48 : f32 to vector<2x64x128xf32>
    %53 = arith.cmpf ogt, %51, %52 : vector<2x64x128xf32>
    %cst_49 = arith.constant 2.000000e-01 : f32
    %54 = vector.broadcast %cst_49 : f32 to vector<2x64x128xf32>
    %55 = arith.mulf %54, %51 : vector<2x64x128xf32>
    %56 = arith.select %53, %51, %55 : vector<2x64x128xi1>, vector<2x64x128xf32>
    %57 = arith.truncf %56 : vector<2x64x128xf32> to vector<2x64x128xbf16>
    %c0_50 = arith.constant 0 : index
    %c0_51 = arith.constant 0 : index
    %c0_52 = arith.constant 0 : index
    %58 = vector.load %arg4[%c0_50, %c0_51, %c0_52] : memref<2x64x128xbf16, #tpu.memory_space<vmem>>, vector<2x64x128xbf16>
    tpu.vector_store %arg4[%c0_50, %c0_51, %c0_52], %57 {strides = array<i32>} : memref<2x64x128xbf16, #tpu.memory_space<vmem>>, vector<2x64x128xbf16>,
    return
  }
  func.func @transform_0(%arg0: i32, %arg1: i32) -> (i32, i32, i32, i32) {
    %c0_i32 = arith.constant 0 : i32
    %c0_i32_0 = arith.constant 0 : i32
    %c0_i32_1 = arith.constant 0 : i32
    %c0_i32_2 = arith.constant 0 : i32
    return %arg0, %c0_i32, %c0_i32_0, %c0_i32_1 : i32, i32, i32, i32
  }
  func.func @transform_1(%arg0: i32, %arg1: i32) -> (i32, i32, i32, i32) {
    %c0_i32 = arith.constant 0 : i32
    %c0_i32_0 = arith.constant 0 : i32
    %c0_i32_1 = arith.constant 0 : i32
    %c0_i32_2 = arith.constant 0 : i32
    return %c0_i32, %c0_i32_0, %c0_i32_1, %arg1 : i32, i32, i32, i32
  }
  func.func @transform_2(%arg0: i32, %arg1: i32) -> (i32, i32, i32) {
    %c0_i32 = arith.constant 0 : i32
    %c0_i32_0 = arith.constant 0 : i32
    return %arg0, %c0_i32, %arg1 : i32, i32, i32
  }
}

</mosaic_0001>

<bundles_post_ra>
// kernel: basic_block_forward.1
= control target key start
LH: loop header
LB: loop body
LE: loop exit
PB: predicated region body
PF: predicated region fallthrough
CT: control target
= control target key end

     0   :  { %s3935_s0 = inlined_call_operand.vmem [shape: bf16[2,9,16,256], index: 0, kind: input, shape index: {}]   ;;  %s3936_s1 = inlined_call_operand.vmem [shape: bf16[2,2,256,128], index: 1, kind: input, shape index: {}]   ;;  %s3937_s2 = inlined_call_operand.hbm [shape: bf16[2,64,128], index: 2, kind: output, shape index: {}]  }
   0x1   :  { %v3068_v0 = vld [vmem:[%s3936_s1 + $0x40] sm:$0xff]   ;;  %v3072_v4 = vld [vmem:[%s3936_s1 + $0x48] sm:$0xff]   ;;  %v3076_v8 = vld [vmem:[%s3936_s1 + $0x50] sm:$0xff]  }
   0x2   :  { %v3069_v1 = vld [vmem:[%s3936_s1 + $0xc0] sm:$0xff]   ;;  %2617 = vmatprep.subr.bf16.mxu0 %v3068_v0  ;;  %v3073_v5 = vld [vmem:[%s3936_s1 + $0xc8] sm:$0xff]   ;;  %v3077_v9 = vld [vmem:[%s3936_s1 + $0xd0] sm:$0xff]  }
   0x3   :  { %v3070_v2 = vld [vmem:[%s3936_s1] sm:$0xff]   ;;  %2729 = vmatprep.subr.bf16.mxu1 %v3069_v1  ;;  %v3074_v6 = vld [vmem:[%s3936_s1 + $0x8] sm:$0xff]   ;;  %v3078_v10 = vld [vmem:[%s3936_s1 + $0x10] sm:$0xff]  }
   0x4   :  { %v3071_v3 = vld [vmem:[%s3936_s1 + $0x80] sm:$0xff]   ;;  %2618 = vmatpush3.bf16.msra.mxu0 %v3070_v2  ;;  %v3075_v7 = vld [vmem:[%s3936_s1 + $0x88] sm:$0xff]   ;;  %v3079_v11 = vld [vmem:[%s3936_s1 + $0x90] sm:$0xff]  }
   0x5   :  { %2730 = vmatpush3.bf16.msra.mxu1 %v3071_v3  ;;  %2619 = vmatprep.subr.bf16.mxu0 %v3072_v4  ;;  %v3080_v12 = vld [vmem:[%s3936_s1 + $0x58] sm:$0xff]   ;;  %v3084_v16 = vld [vmem:[%s3936_s1 + $0x60] sm:$0xff]   ;;  %v3088_v20 = vld [vmem:[%s3936_s1 + $0x68] sm:$0xff]  }
   0x6   :  { %2731 = vmatprep.subr.bf16.mxu1 %v3073_v5  ;;  %v3081_v13 = vld [vmem:[%s3936_s1 + $0xd8] sm:$0xff]   ;;  %v3085_v17 = vld [vmem:[%s3936_s1 + $0xe0] sm:$0xff]   ;;  %v3089_v21 = vld [vmem:[%s3936_s1 + $0xe8] sm:$0xff]  }
   0x7   :  { %v3082_v14 = vld [vmem:[%s3936_s1 + $0x18] sm:$0xff]   ;;  %v3086_v18 = vld [vmem:[%s3936_s1 + $0x20] sm:$0xff]   ;;  %v3090_v22 = vld [vmem:[%s3936_s1 + $0x28] sm:$0xff]  }
   0x8   :  { %2620 = vmatpush3.bf16.msra.mxu0 %v3074_v6  ;;  %v3083_v15 = vld [vmem:[%s3936_s1 + $0x98] sm:$0xff]   ;;  %v3087_v19 = vld [vmem:[%s3936_s1 + $0xa0] sm:$0xff]   ;;  %v3091_v23 = vld [vmem:[%s3936_s1 + $0xa8] sm:$0xff]  }
   0x9   :  { %2732 = vmatpush3.bf16.msra.mxu1 %v3075_v7  ;;  %2621 = vmatprep.subr.bf16.mxu0 %v3076_v8  ;;  %v3092_v24 = vld [vmem:[%s3936_s1 + $0x70] sm:$0xff]   ;;  %v3096_v28 = vld [vmem:[%s3936_s1 + $0x78] sm:$0xff]   ;;  %v3100_v32 = vld [vmem:[%s3935_s0] ss:$8 sps:$4 sm:$0xff]  }
   0xa   :  { %2733 = vmatprep.subr.bf16.mxu1 %v3077_v9  ;;  %v3093_v25 = vld [vmem:[%s3936_s1 + $0xf0] sm:$0xff]   ;;  %v3097_v29 = vld [vmem:[%s3936_s1 + $0xf8] sm:$0xff]   ;;  %v3102_v33 = vld [vmem:[%s3935_s0 + $0x4] ss:$8 sps:$4 sm:$0xff]  }
   0xb   :  { %v3094_v26 = vld [vmem:[%s3936_s1 + $0x30] sm:$0xff]   ;;  %v3098_v30 = vld [vmem:[%s3936_s1 + $0x38] sm:$0xff]   ;;  %v3103_v34 = vld [vmem:[%s3936_s1 + $0x1c0] sm:$0xff]   ;;  %365 = vmatprep.mubr.bf16.mxu0 %v3102_v33  ;;  %687 = vmatprep.mubr.bf16.mxu1 %v3102_v33 }
   0xc   :  { %2622 = vmatpush3.bf16.msra.mxu0 %v3078_v10  ;;  %v3095_v27 = vld [vmem:[%s3936_s1 + $0xb0] sm:$0xff]   ;;  %v3099_v31 = vld [vmem:[%s3936_s1 + $0xb8] sm:$0xff]   ;;  %v3104_v35 = vld [vmem:[%s3936_s1 + $0x180] sm:$0xff]  }
   0xd   :  { %2734 = vmatpush3.bf16.msra.mxu1 %v3079_v11  ;;  %2623 = vmatprep.subr.bf16.mxu0 %v3080_v12  ;;  %v3105_v36 = vld [vmem:[%s3936_s1 + $0x140] sm:$0xff]   ;;  %v3349_v38 = vld [vmem:[%s3935_s0 + $0x14] ss:$8 sps:$4 sm:$0xff]   ;;  %v3354_v39 = vld [vmem:[%s3935_s0 + $0x10] ss:$8 sps:$4 sm:$0xff]  }
   0xe   :  { %2735 = vmatprep.subr.bf16.mxu1 %v3081_v13  ;;  %v3106_v37 = vld [vmem:[%s3936_s1 + $0x100] sm:$0xff]   ;;  %v3113_v41 = vld [vmem:[%s3936_s1 + $0x1c8] sm:$0xff]   ;;  %v3387_v46 = vld [vmem:[%s3935_s0 + $0x34] ss:$8 sps:$4 sm:$0xff]  }
   0xf   :  { %v3359_v40 = vld [vmem:[%s3935_s0 + $0x24] ss:$8 sps:$4 sm:$0xff]   ;;  %v3382_v45 = vld [vmem:[%s3935_s0 + $0x20] ss:$8 sps:$4 sm:$0xff]   ;;  %v3123_v47 = vld [vmem:[%s3936_s1 + $0x1d0] sm:$0xff]  }
  0x10   :  { %2624 = vmatpush3.bf16.msra.mxu0 %v3082_v14  ;;  %v3114_v42 = vld [vmem:[%s3936_s1 + $0x188] sm:$0xff]   ;;  %v3124_v48 = vld [vmem:[%s3936_s1 + $0x190] sm:$0xff]   ;;  %v3133_v52 = vld [vmem:[%s3936_s1 + $0x1d8] sm:$0xff]  }
  0x11   :  { %2736 = vmatpush3.bf16.msra.mxu1 %v3083_v15  ;;  %2625 = vmatprep.subr.bf16.mxu0 %v3084_v16  ;;  %v3115_v43 = vld [vmem:[%s3936_s1 + $0x148] sm:$0xff]   ;;  %v3125_v49 = vld [vmem:[%s3936_s1 + $0x150] sm:$0xff]   ;;  %v3134_v54 = vld [vmem:[%s3936_s1 + $0x198] sm:$0xff]  }
  0x12   :  { %2737 = vmatprep.subr.bf16.mxu1 %v3085_v17  ;;  %v3116_v44 = vld [vmem:[%s3936_s1 + $0x108] sm:$0xff]   ;;  %v3126_v50 = vld [vmem:[%s3936_s1 + $0x110] sm:$0xff]   ;;  %v3135_v55 = vld [vmem:[%s3936_s1 + $0x158] sm:$0xff]  }
  0x13   :  { %v3408_v51 = vld [vmem:[%s3935_s0 + $0x30] ss:$8 sps:$4 sm:$0xff]   ;;  %v3416_v53 = vld [vmem:[%s3935_s0 + $0x44] ss:$8 sps:$4 sm:$0xff]   ;;  %v3446_v61 = vld [vmem:[%s3935_s0 + $0x40] ss:$8 sps:$4 sm:$0xff]  }
  0x14   :  { %2626 = vmatpush3.bf16.msra.mxu0 %v3086_v18  ;;  %v3136_v56 = vld [vmem:[%s3936_s1 + $0x118] sm:$0xff]   ;;  %v3143_v57 = vld [vmem:[%s3936_s1 + $0x1e0] sm:$0xff]   ;;  %v3153_v63 = vld [vmem:[%s3936_s1 + $0x1e8] sm:$0xff]  }
  0x15   :  { %2738 = vmatpush3.bf16.msra.mxu1 %v3087_v19  ;;  %2627 = vmatprep.subr.bf16.mxu0 %v3088_v20  ;;  %v3144_v58 = vld [vmem:[%s3936_s1 + $0x1a0] sm:$0xff]   ;;  %v3451_v62 = vld [vmem:[%s3935_s0 + $0x54] ss:$8 sps:$4 sm:$0xff]   ;;  %v3154_v0 = vld [vmem:[%s3936_s1 + $0x1a8] sm:$0xff]  }
  0x16   :  { %2739 = vmatprep.subr.bf16.mxu1 %v3089_v21  ;;  %v3145_v59 = vld [vmem:[%s3936_s1 + $0x160] sm:$0xff]   ;;  %v3155_v1 = vld [vmem:[%s3936_s1 + $0x168] sm:$0xff]   ;;  %v3472_v3 = vld [vmem:[%s3935_s0 + $0x50] ss:$8 sps:$4 sm:$0xff]  }
  0x17   :  { %v3146_v60 = vld [vmem:[%s3936_s1 + $0x120] sm:$0xff]   ;;  %v3156_v2 = vld [vmem:[%s3936_s1 + $0x128] sm:$0xff]   ;;  %v3163_v5 = vld [vmem:[%s3936_s1 + $0x1f0] sm:$0xff]  }
  0x18   :  { %2628 = vmatpush3.bf16.msra.mxu0 %v3090_v22  ;;  %v3477_v4 = vld [vmem:[%s3935_s0 + $0x64] ss:$8 sps:$4 sm:$0xff]   ;;  %v3164_v6 = vld [vmem:[%s3936_s1 + $0x1b0] sm:$0xff]   ;;  %v3498_v9 = vld [vmem:[%s3935_s0 + $0x60] ss:$8 sps:$4 sm:$0xff]  }
  0x19   :  { %2740 = vmatpush3.bf16.msra.mxu1 %v3091_v23  ;;  %2629 = vmatprep.subr.bf16.mxu0 %v3092_v24  ;;  %v3165_v7 = vld [vmem:[%s3936_s1 + $0x170] sm:$0xff]   ;;  %v3173_v11 = vld [vmem:[%s3936_s1 + $0x1f8] sm:$0xff]  }
  0x1a   :  { %2741 = vmatprep.subr.bf16.mxu1 %v3093_v25  ;;  %v3166_v8 = vld [vmem:[%s3936_s1 + $0x130] sm:$0xff]   ;;  %v3174_v12 = vld [vmem:[%s3936_s1 + $0x1b8] sm:$0xff]  }
  0x1b   :  { %v3503_v10 = vld [vmem:[%s3935_s0 + $0x74] ss:$8 sps:$4 sm:$0xff]  }
  0x1c   :  { %2630 = vmatpush3.bf16.msra.mxu0 %v3094_v26  ;;  %v3175_v13 = vld [vmem:[%s3936_s1 + $0x178] sm:$0xff]  }
  0x1d   :  { %2742 = vmatpush3.bf16.msra.mxu1 %v3095_v27  ;;  %2631 = vmatprep.subr.bf16.mxu0 %v3096_v28  ;;  %v3176_v14 = vld [vmem:[%s3936_s1 + $0x138] sm:$0xff]  }
  0x1e   :  { %2743 = vmatprep.subr.bf16.mxu1 %v3097_v29 }
  0x20   :  { %2632 = vmatpush3.bf16.msra.mxu0 %v3098_v30 }
  0x21   :  { %2744 = vmatpush3.bf16.msra.mxu1 %v3099_v31  ;;  %2841 = vmatprep.subr.bf16.mxu0 %v3105_v36 }
  0x22   :  { %2953 = vmatprep.subr.bf16.mxu1 %v3103_v34 }
  0x23   :  { %366 = vmatmul.mubr.bf16.vlgmr.msra.gmra.mrb[0].mxu0 %v3100_v32 }
  0x24   :  { %688 = vmatmul.mubr.bf16.vlgmr.msra.gmra.mrb[0].mxu1 %v3100_v32  ;;  %2842 = vmatpush3.bf16.msra.mxu0 %v3106_v37 }
  0x25   :  { %2954 = vmatpush3.bf16.msra.mxu1 %v3104_v35  ;;  %373 = vmatprep.mubr.bf16.mxu0 %v3349_v38 }
  0x26   :  { %695 = vmatprep.mubr.bf16.mxu1 %v3349_v38  ;;  %2955 = vmatprep.subr.bf16.mxu1 %v3113_v41 }
  0x27   :  { %2843 = vmatprep.subr.bf16.mxu0 %v3115_v43 }
  0x28   :  { %2844 = vmatpush3.bf16.msra.mxu0 %v3116_v44 }
  0x29   :  { %2956 = vmatpush3.bf16.msra.mxu1 %v3114_v42  ;;  %2845 = vmatprep.subr.bf16.mxu0 %v3125_v49 }
  0x2a   :  { %2957 = vmatprep.subr.bf16.mxu1 %v3123_v47 }
  0x2b   :  { %374 = vmatmul.mubr.bf16.gmra.mrb[4].mxu0 %v3354_v39 }
  0x2c   :  { %696 = vmatmul.mubr.bf16.gmra.mrb[4].mxu1 %v3354_v39  ;;  %381 = vmatprep.mubr.bf16.mxu0 %v3359_v40 }
  0x2d   :  { %703 = vmatprep.mubr.bf16.mxu1 %v3359_v40  ;;  %2958 = vmatpush3.bf16.msra.mxu1 %v3124_v48 }
  0x2e   :  { %2846 = vmatpush3.bf16.msra.mxu0 %v3126_v50  ;;  %2959 = vmatprep.subr.bf16.mxu1 %v3133_v52 }
  0x2f   :  { %2847 = vmatprep.subr.bf16.mxu0 %v3135_v55 }
  0x31   :  { %2960 = vmatpush3.bf16.msra.mxu1 %v3134_v54 }
  0x32   :  { %2848 = vmatpush3.bf16.msra.mxu0 %v3136_v56  ;;  %2961 = vmatprep.subr.bf16.mxu1 %v3143_v57 }
  0x33   :  { %382 = vmatmul.mubr.bf16.gmra.mrb[8].mxu0 %v3382_v45  ;;  %2849 = vmatprep.subr.bf16.mxu0 %v3145_v59 }
  0x34   :  { %704 = vmatmul.mubr.bf16.gmra.mrb[8].mxu1 %v3382_v45  ;;  %389 = vmatprep.mubr.bf16.mxu0 %v3387_v46 }
  0x35   :  { %711 = vmatprep.mubr.bf16.mxu1 %v3387_v46  ;;  %2962 = vmatpush3.bf16.msra.mxu1 %v3144_v58 }
  0x36   :  { %2850 = vmatpush3.bf16.msra.mxu0 %v3146_v60  ;;  %2963 = vmatprep.subr.bf16.mxu1 %v3153_v63 }
  0x37   :  { %2851 = vmatprep.subr.bf16.mxu0 %v3155_v1 }
  0x39   :  { %2964 = vmatpush3.bf16.msra.mxu1 %v3154_v0 }
  0x3a   :  { %2852 = vmatpush3.bf16.msra.mxu0 %v3156_v2  ;;  %2965 = vmatprep.subr.bf16.mxu1 %v3163_v5 }
  0x3b   :  { %390 = vmatmul.mubr.bf16.gmra.mrb[12].mxu0 %v3408_v51  ;;  %2853 = vmatprep.subr.bf16.mxu0 %v3165_v7 }
  0x3c   :  { %712 = vmatmul.mubr.bf16.gmra.mrb[12].mxu1 %v3408_v51  ;;  %397 = vmatprep.mubr.bf16.mxu0 %v3416_v53 }
  0x3d   :  { %719 = vmatprep.mubr.bf16.mxu1 %v3416_v53  ;;  %2966 = vmatpush3.bf16.msra.mxu1 %v3164_v6 }
  0x3e   :  { %2854 = vmatpush3.bf16.msra.mxu0 %v3166_v8  ;;  %2967 = vmatprep.subr.bf16.mxu1 %v3173_v11 }
  0x3f   :  { %2855 = vmatprep.subr.bf16.mxu0 %v3175_v13 }
  0x41   :  { %2968 = vmatpush3.bf16.msra.mxu1 %v3174_v12 }
  0x42   :  { %2856 = vmatpush3.bf16.msra.mxu0 %v3176_v14 }
  0x43   :  { %398 = vmatmul.mubr.bf16.gmra.mrb[16].mxu0 %v3446_v61 }
  0x44   :  { %720 = vmatmul.mubr.bf16.gmra.mrb[16].mxu1 %v3446_v61  ;;  %405 = vmatprep.mubr.bf16.mxu0 %v3451_v62 }
  0x45   :  { %727 = vmatprep.mubr.bf16.mxu1 %v3451_v62 }
  0x4b   :  { %406 = vmatmul.mubr.bf16.gmra.mrb[20].mxu0 %v3472_v3 }
  0x4c   :  { %728 = vmatmul.mubr.bf16.gmra.mrb[20].mxu1 %v3472_v3  ;;  %413 = vmatprep.mubr.bf16.mxu0 %v3477_v4 }
  0x4d   :  { %735 = vmatprep.mubr.bf16.mxu1 %v3477_v4 }
  0x53   :  { %414 = vmatmul.mubr.bf16.gmra.mrb[24].mxu0 %v3498_v9 }
  0x54   :  { %736 = vmatmul.mubr.bf16.gmra.mrb[24].mxu1 %v3498_v9  ;;  %421 = vmatprep.mubr.bf16.mxu0 %v3503_v10 }
  0x55   :  { %743 = vmatprep.mubr.bf16.mxu1 %v3503_v10 }
  0x56   :  { %7 = vsyncpa [#allocation4], 0  ;;  %v3524_v15 = vld [vmem:[%s3935_s0 + $0x70] ss:$8 sps:$4 sm:$0xff]   ;;  %v3140_v16 = vld [vmem:[%s3935_s0 + $0x94] ss:$8 sps:$4 sm:$0xff]   ;;  %v848_v34 = vlaneseq }
  0x57   :  { %v3142_v17 = vld [vmem:[%s3935_s0 + $0x90] ss:$8 sps:$4 sm:$0xff]   ;;  %v3537_v18 = vld [vmem:[%s3935_s0 + $0xa4] ss:$8 sps:$4 sm:$0xff]   ;;  %v3544_v19 = vld [vmem:[%s3935_s0 + $0xa0] ss:$8 sps:$4 sm:$0xff]  }
  0x58   :  { %v3549_v20 = vld [vmem:[%s3935_s0 + $0xb4] ss:$8 sps:$4 sm:$0xff]   ;;  %v3558_v21 = vld [vmem:[%s3935_s0 + $0xb0] ss:$8 sps:$4 sm:$0xff]   ;;  %v3563_v22 = vld [vmem:[%s3935_s0 + $0xc4] ss:$8 sps:$4 sm:$0xff]  }
  0x59   :  { %v3572_v23 = vld [vmem:[%s3935_s0 + $0xc0] ss:$8 sps:$4 sm:$0xff]   ;;  %v3577_v24 = vld [vmem:[%s3935_s0 + $0xd4] ss:$8 sps:$4 sm:$0xff]   ;;  %v3586_v25 = vld [vmem:[%s3935_s0 + $0xd0] ss:$8 sps:$4 sm:$0xff]  }
  0x5a   :  { %v3591_v26 = vld [vmem:[%s3935_s0 + $0xe4] ss:$8 sps:$4 sm:$0xff]   ;;  %v3600_v27 = vld [vmem:[%s3935_s0 + $0xe0] ss:$8 sps:$4 sm:$0xff]   ;;  %v3605_v28 = vld [vmem:[%s3935_s0 + $0xf4] ss:$8 sps:$4 sm:$0xff]  }
  0x5b   :  { %422 = vmatmul.mubr.bf16.gmra.mrb[28].mxu0 %v3524_v15  ;;  %v3614_v29 = vld [vmem:[%s3935_s0 + $0xf0] ss:$8 sps:$4 sm:$0xff]   ;;  %v3619_v30 = vld [vmem:[%s3935_s0 + $0x104] ss:$8 sps:$4 sm:$0xff]   ;;  %v3628_v31 = vld [vmem:[%s3935_s0 + $0x100] ss:$8 sps:$4 sm:$0xff]  }
  0x5c   :  { %744 = vmatmul.mubr.bf16.gmra.mrb[28].mxu1 %v3524_v15  ;;  %429 = vmatprep.mubr.bf16.mxu0 %v3140_v16  ;;  %v3180_v32 = vld [vmem:[%s3935_s0 + $0x84] ss:$8 sps:$4 sm:$0xff]   ;;  %v3182_v33 = vld [vmem:[%s3935_s0 + $0x80] ss:$8 sps:$4 sm:$0xff]  }
  0x5d   :  { %751 = vmatprep.mubr.bf16.mxu1 %v3140_v16 }
  0x63   :  { %430 = vmatmul.mubr.bf16.gmra.mrb[32].mxu0 %v3142_v17 }
  0x64   :  { %752 = vmatmul.mubr.bf16.gmra.mrb[32].mxu1 %v3142_v17  ;;  %437 = vmatprep.mubr.bf16.mxu0 %v3537_v18 }
  0x65   :  { %759 = vmatprep.mubr.bf16.mxu1 %v3537_v18 }
  0x6b   :  { %438 = vmatmul.mubr.bf16.gmra.mrb[36].mxu0 %v3544_v19 }
  0x6c   :  { %760 = vmatmul.mubr.bf16.gmra.mrb[36].mxu1 %v3544_v19  ;;  %445 = vmatprep.mubr.bf16.mxu0 %v3549_v20 }
  0x6d   :  { %767 = vmatprep.mubr.bf16.mxu1 %v3549_v20 }
  0x73   :  { %446 = vmatmul.mubr.bf16.gmra.mrb[40].mxu0 %v3558_v21 }
  0x74   :  { %768 = vmatmul.mubr.bf16.gmra.mrb[40].mxu1 %v3558_v21  ;;  %453 = vmatprep.mubr.bf16.mxu0 %v3563_v22 }
  0x75   :  { %775 = vmatprep.mubr.bf16.mxu1 %v3563_v22 }
  0x7b   :  { %454 = vmatmul.mubr.bf16.gmra.mrb[44].mxu0 %v3572_v23 }
  0x7c   :  { %776 = vmatmul.mubr.bf16.gmra.mrb[44].mxu1 %v3572_v23  ;;  %461 = vmatprep.mubr.bf16.mxu0 %v3577_v24 }
  0x7d   :  { %783 = vmatprep.mubr.bf16.mxu1 %v3577_v24 }
  0x83   :  { %462 = vmatmul.mubr.bf16.gmra.mrb[48].mxu0 %v3586_v25 }
  0x84   :  { %784 = vmatmul.mubr.bf16.gmra.mrb[48].mxu1 %v3586_v25  ;;  %469 = vmatprep.mubr.bf16.mxu0 %v3591_v26 }
  0x85   :  { %791 = vmatprep.mubr.bf16.mxu1 %v3591_v26 }
  0x8b   :  { %470 = vmatmul.mubr.bf16.gmra.mrb[52].mxu0 %v3600_v27 }
  0x8c   :  { %792 = vmatmul.mubr.bf16.gmra.mrb[52].mxu1 %v3600_v27  ;;  %477 = vmatprep.mubr.bf16.mxu0 %v3605_v28 }
  0x8d   :  { %799 = vmatprep.mubr.bf16.mxu1 %v3605_v28 }
  0x93   :  { %478 = vmatmul.mubr.bf16.gmra.mrb[56].mxu0 %v3614_v29 }
  0x94   :  { %800 = vmatmul.mubr.bf16.gmra.mrb[56].mxu1 %v3614_v29  ;;  %485 = vmatprep.mubr.bf16.mxu0 %v3619_v30 }
  0x95   :  { %807 = vmatprep.mubr.bf16.mxu1 %v3619_v30 }
  0x9b   :  { %486 = vmatmul.mubr.bf16.gmra.mrb[60].mxu0 %v3628_v31 }
  0x9c   :  { %808 = vmatmul.mubr.bf16.gmra.mrb[60].mxu1 %v3628_v31  ;;  %1333 = vmatprep.mubr.bf16.mxu0 %v3349_v38 }
  0x9d   :  { %1719 = vmatprep.mubr.bf16.mxu1 %v3349_v38 }
  0xa3   :  { %1334 = vmatmul.mubr.bf16.vlgmr.msra.gmra.mrb[64].mxu0 %v3354_v39 }
  0xa4   :  { %1720 = vmatmul.mubr.bf16.vlgmr.msra.gmra.mrb[64].mxu1 %v3354_v39  ;;  %1341 = vmatprep.mubr.bf16.mxu0 %v3359_v40  ;;  %v3680_v39 = vshrl.u32 %v848_v34, 7 }
  0xa5   :  { %1727 = vmatprep.mubr.bf16.mxu1 %v3359_v40 }
  0xa6   :  { %vm850_vm0 = vcmp.lt.s32.totalorder %v3680_v39, 7 }
  0xab   :  { %1342 = vmatmul.mubr.bf16.gmra.mrb[68].mxu0 %v3382_v45 }
  0xac   :  { %1728 = vmatmul.mubr.bf16.gmra.mrb[68].mxu1 %v3382_v45  ;;  %1349 = vmatprep.mubr.bf16.mxu0 %v3387_v46 }
  0xad   :  { %1735 = vmatprep.mubr.bf16.mxu1 %v3387_v46 }
  0xb3   :  { %1350 = vmatmul.mubr.bf16.gmra.mrb[72].mxu0 %v3408_v51 }
  0xb4   :  { %1736 = vmatmul.mubr.bf16.gmra.mrb[72].mxu1 %v3408_v51  ;;  %1357 = vmatprep.mubr.bf16.mxu0 %v3416_v53 }
  0xb5   :  { %1743 = vmatprep.mubr.bf16.mxu1 %v3416_v53 }
  0xbb   :  { %1358 = vmatmul.mubr.bf16.gmra.mrb[76].mxu0 %v3446_v61 }
  0xbc   :  { %1744 = vmatmul.mubr.bf16.gmra.mrb[76].mxu1 %v3446_v61  ;;  %1365 = vmatprep.mubr.bf16.mxu0 %v3451_v62 }
  0xbd   :  { %1751 = vmatprep.mubr.bf16.mxu1 %v3451_v62 }
  0xc3   :  { %1366 = vmatmul.mubr.bf16.gmra.mrb[80].mxu0 %v3472_v3 }
  0xc4   :  { %1752 = vmatmul.mubr.bf16.gmra.mrb[80].mxu1 %v3472_v3  ;;  %1373 = vmatprep.mubr.bf16.mxu0 %v3477_v4 }
  0xc5   :  { %1759 = vmatprep.mubr.bf16.mxu1 %v3477_v4 }
  0xcb   :  { %1374 = vmatmul.mubr.bf16.gmra.mrb[84].mxu0 %v3498_v9 }
  0xcc   :  { %1760 = vmatmul.mubr.bf16.gmra.mrb[84].mxu1 %v3498_v9  ;;  %1381 = vmatprep.mubr.bf16.mxu0 %v3503_v10 }
  0xcd   :  { %1767 = vmatprep.mubr.bf16.mxu1 %v3503_v10 }
  0xd3   :  { %1382 = vmatmul.mubr.bf16.gmra.mrb[88].mxu0 %v3524_v15 }
  0xd4   :  { %1768 = vmatmul.mubr.bf16.gmra.mrb[88].mxu1 %v3524_v15  ;;  %1389 = vmatprep.mubr.bf16.mxu0 %v3180_v32 }
  0xd5   :  { %1775 = vmatprep.mubr.bf16.mxu1 %v3180_v32 }
  0xdb   :  { %1390 = vmatmul.mubr.bf16.gmra.mrb[92].mxu0 %v3182_v33 }
  0xdc   :  { %1776 = vmatmul.mubr.bf16.gmra.mrb[92].mxu1 %v3182_v33  ;;  %1397 = vmatprep.mubr.bf16.mxu0 %v3537_v18 }
  0xdd   :  { %1783 = vmatprep.mubr.bf16.mxu1 %v3537_v18 }
  0xe3   :  { %1398 = vmatmul.mubr.bf16.gmra.mrb[96].mxu0 %v3544_v19 }
  0xe4   :  { %1784 = vmatmul.mubr.bf16.gmra.mrb[96].mxu1 %v3544_v19  ;;  %1405 = vmatprep.mubr.bf16.mxu0 %v3549_v20 }
  0xe5   :  { %1791 = vmatprep.mubr.bf16.mxu1 %v3549_v20 }
  0xeb   :  { %1406 = vmatmul.mubr.bf16.gmra.mrb[100].mxu0 %v3558_v21 }
  0xec   :  { %1792 = vmatmul.mubr.bf16.gmra.mrb[100].mxu1 %v3558_v21  ;;  %1413 = vmatprep.mubr.bf16.mxu0 %v3563_v22 }
  0xed   :  { %1799 = vmatprep.mubr.bf16.mxu1 %v3563_v22 }
  0xf3   :  { %1414 = vmatmul.mubr.bf16.gmra.mrb[104].mxu0 %v3572_v23 }
  0xf4   :  { %1800 = vmatmul.mubr.bf16.gmra.mrb[104].mxu1 %v3572_v23  ;;  %1421 = vmatprep.mubr.bf16.mxu0 %v3577_v24 }
  0xf5   :  { %1807 = vmatprep.mubr.bf16.mxu1 %v3577_v24 }
  0xf6   :  { %v2633_v36 = vpop.f32.mrb[0].mxu0 }
  0xf7   :  { %v2745_v35 = vpop.f32.mrb[0].mxu1  ;;  %v2634_v38 = vpop.f32.mrb[1].mxu0 }
  0xf8   :  { %v2746_v37 = vpop.f32.mrb[1].mxu1  ;;  %v2635_v41 = vadd.f32 %v2634_v38, %v2633_v36  ;;  %v2636_v43 = vpop.f32.mrb[2].mxu0 }
  0xf9   :  { %v2747_v40 = vadd.f32 %v2746_v37, %v2745_v35  ;;  %v2748_v42 = vpop.f32.mrb[2].mxu1  ;;  %v2637_v45 = vpop.f32.mrb[3].mxu0  ;;  %v3185_v37 = vld [vmem:[%s3935_s0 + $0x110] ss:$8 sps:$4 sm:$0xff]  }
  0xfa   :  { %v2749_v44 = vpop.f32.mrb[3].mxu1 }
  0xfb   :  { %v2750_v46 = vadd.f32 %v2749_v44, %v2748_v42  ;;  %1422 = vmatmul.mubr.bf16.gmra.mrb[108].mxu0 %v3586_v25  ;;  %v816_v47 = vrot.slane %v2747_v40, 1 }
  0xfc   :  { %1808 = vmatmul.mubr.bf16.gmra.mrb[108].mxu1 %v3586_v25  ;;  %1429 = vmatprep.mubr.bf16.mxu0 %v3591_v26  ;;  %v3183_v25 = vld [vmem:[%s3935_s0 + $0x114] ss:$8 sps:$4 sm:$0xff]   ;;  %s3214_s0 = smov [#allocation3]  }
  0xfd   :  { %v817_v48 = vrot.slane %v2750_v46, 1  ;;  %1815 = vmatprep.mubr.bf16.mxu1 %v3591_v26  ;;  %s2271_s11 = sshll.u32 %s3214_s0, 4  ;;  %s2272_s11 = int_to_ptr.vmem [resolvable:$true] %s2271_s11 }
  0xfe   :  { %v2639_v50 = vpop.f32.mrb[4].mxu0  ;;  %s3190_s12 = scalar_lea.vmem %s2272_s11, 1024  ;;  %p3195_p1 = scmp.lt.s32.totalorder %s2272_s11, %s2272_s11 }
  0xff   :  { %v2751_v49 = vpop.f32.mrb[4].mxu1  ;;  %v881_v51 = vsel %vm850_vm0, %v816_v47, %v817_v48  ;;  %v2640_v53 = vpop.f32.mrb[5].mxu0  ;;  %p3191_p0 = scmp.ne.s32.totalorder %s2272_s11, %s3190_s12  ;;  %p3196_p2 = scmp.lt.s32.totalorder %s3190_s12, %s3190_s12 }
 0x100   :  { %v2752_v52 = vpop.f32.mrb[5].mxu1  ;;  %v3689_v54 = vadd.f32 %v2635_v41, %v881_v51  ;;  %v2641_v56 = vadd.f32 %v2640_v53, %v2639_v50  ;;  %v2642_v58 = vpop.f32.mrb[6].mxu0 }
 0x101   :  { %v2753_v55 = vadd.f32 %v2752_v52, %v2751_v49  ;;  %v2754_v57 = vpop.f32.mrb[6].mxu1  ;;  %v2643_v60 = vpop.f32.mrb[7].mxu0  ;;  %p3197_p3 = por %p3196_p2, %p3195_p1 }
 0x102   :  { %v2755_v59 = vpop.f32.mrb[7].mxu1 }
 0x103   :  { %v2756_v61 = vadd.f32 %v2755_v59, %v2754_v57  ;;  %1430 = vmatmul.mubr.bf16.gmra.mrb[112].mxu0 %v3600_v27  ;;  %v818_v62 = vrot.slane %v2753_v55, 1  ;;  %p3198_p4 = pnand %p3197_p3, %p3191_p0 }
 0x104   :  { %1816 = vmatmul.mubr.bf16.gmra.mrb[112].mxu1 %v3600_v27  ;;  %1437 = vmatprep.mubr.bf16.mxu0 %v3605_v28 }
 0x105   :  { %v819_v63 = vrot.slane %v2756_v61, 1  ;;  %1823 = vmatprep.mubr.bf16.mxu1 %v3605_v28 }
 0x106   :  { %v2645_v1 = vpop.f32.mrb[8].mxu0 }
 0x107   :  { %v2757_v0 = vpop.f32.mrb[8].mxu1  ;;  %v879_v2 = vsel %vm850_vm0, %v818_v62, %v819_v63  ;;  %v2646_v4 = vpop.f32.mrb[9].mxu0 }
 0x108   :  { %v2758_v3 = vpop.f32.mrb[9].mxu1  ;;  %v3697_v5 = vadd.f32 %v2641_v56, %v879_v2  ;;  %v2647_v7 = vadd.f32 %v2646_v4, %v2645_v1  ;;  %v2648_v9 = vpop.f32.mrb[10].mxu0 }
 0x109   :  { %v2759_v6 = vadd.f32 %v2758_v3, %v2757_v0  ;;  %v2760_v8 = vpop.f32.mrb[10].mxu1  ;;  %v2649_v11 = vpop.f32.mrb[11].mxu0 }
 0x10a   :  { %v2761_v10 = vpop.f32.mrb[11].mxu1 }
 0x10b   :  { %v2762_v12 = vadd.f32 %v2761_v10, %v2760_v8  ;;  %1438 = vmatmul.mubr.bf16.gmra.mrb[116].mxu0 %v3614_v29  ;;  %v820_v13 = vrot.slane %v2759_v6, 1 }
 0x10c   :  { %1824 = vmatmul.mubr.bf16.gmra.mrb[116].mxu1 %v3614_v29  ;;  %1445 = vmatprep.mubr.bf16.mxu0 %v3619_v30 }
 0x10d   :  { %v821_v14 = vrot.slane %v2762_v12, 1  ;;  %1831 = vmatprep.mubr.bf16.mxu1 %v3619_v30 }
 0x10e   :  { %v2651_v16 = vpop.f32.mrb[12].mxu0 }
 0x10f   :  { %v2763_v15 = vpop.f32.mrb[12].mxu1  ;;  %v877_v17 = vsel %vm850_vm0, %v820_v13, %v821_v14  ;;  %v2652_v19 = vpop.f32.mrb[13].mxu0 }
 0x110   :  { %v2764_v18 = vpop.f32.mrb[13].mxu1  ;;  %v3705_v20 = vadd.f32 %v2647_v7, %v877_v17  ;;  %v2653_v22 = vadd.f32 %v2652_v19, %v2651_v16  ;;  %v2654_v24 = vpop.f32.mrb[14].mxu0 }
 0x111   :  { %v2765_v21 = vadd.f32 %v2764_v18, %v2763_v15  ;;  %v2766_v23 = vpop.f32.mrb[14].mxu1  ;;  %v2655_v27 = vpop.f32.mrb[15].mxu0 }
 0x112   :  { %v2767_v26 = vpop.f32.mrb[15].mxu1 }
 0x113   :  { %v2768_v28 = vadd.f32 %v2767_v26, %v2766_v23  ;;  %1446 = vmatmul.mubr.bf16.gmra.mrb[120].mxu0 %v3628_v31  ;;  %v822_v29 = vrot.slane %v2765_v21, 1 }
 0x114   :  { %1832 = vmatmul.mubr.bf16.gmra.mrb[120].mxu1 %v3628_v31  ;;  %1453 = vmatprep.mubr.bf16.mxu0 %v3183_v25 }
 0x115   :  { %v823_v30 = vrot.slane %v2768_v28, 1  ;;  %1839 = vmatprep.mubr.bf16.mxu1 %v3183_v25 }
 0x116   :  { %v2657_v33 = vpop.f32.mrb[16].mxu0 }
 0x117   :  { %v2769_v32 = vpop.f32.mrb[16].mxu1  ;;  %v875_v34 = vsel %vm850_vm0, %v822_v29, %v823_v30  ;;  %v2658_v36 = vpop.f32.mrb[17].mxu0 }
 0x118   :  { %v2770_v35 = vpop.f32.mrb[17].mxu1  ;;  %v3717_v38 = vadd.f32 %v2653_v22, %v875_v34  ;;  %v2659_v41 = vadd.f32 %v2658_v36, %v2657_v33  ;;  %v2660_v42 = vpop.f32.mrb[18].mxu0 }
 0x119   :  { %v2771_v40 = vadd.f32 %v2770_v35, %v2769_v32  ;;  %v2772_v31 = vpop.f32.mrb[18].mxu1  ;;  %v2661_v44 = vpop.f32.mrb[19].mxu0 }
 0x11a   :  { %v2773_v43 = vpop.f32.mrb[19].mxu1 }
 0x11b   :  { %v2774_v45 = vadd.f32 %v2773_v43, %v2772_v31  ;;  %1454 = vmatmul.mubr.bf16.gmra.mrb[124].mxu0 %v3185_v37  ;;  %v824_v46 = vrot.slane %v2771_v40, 1 }
 0x11c   :  { %1840 = vmatmul.mubr.bf16.gmra.mrb[124].mxu1 %v3185_v37 }
 0x11d   :  { %v825_v47 = vrot.slane %v2774_v45, 1 }
 0x11e   :  { %v2663_v49 = vpop.f32.mrb[20].mxu0 }
 0x11f   :  { %v2775_v48 = vpop.f32.mrb[20].mxu1  ;;  %v873_v50 = vsel %vm850_vm0, %v824_v46, %v825_v47  ;;  %v2664_v52 = vpop.f32.mrb[21].mxu0 }
 0x120   :  { %v2776_v51 = vpop.f32.mrb[21].mxu1  ;;  %v3721_v53 = vadd.f32 %v2659_v41, %v873_v50  ;;  %v2665_v56 = vadd.f32 %v2664_v52, %v2663_v49  ;;  %v2666_v58 = vpop.f32.mrb[22].mxu0 }
 0x121   :  { %v2777_v55 = vadd.f32 %v2776_v51, %v2775_v48  ;;  %v2778_v57 = vpop.f32.mrb[22].mxu1  ;;  %v2667_v60 = vpop.f32.mrb[23].mxu0 }
 0x122   :  { %v2779_v59 = vpop.f32.mrb[23].mxu1 }
 0x123   :  { %v2780_v61 = vadd.f32 %v2779_v59, %v2778_v57  ;;  %v826_v62 = vrot.slane %v2777_v55, 1 }
 0x125   :  { %v827_v63 = vrot.slane %v2780_v61, 1 }
 0x126   :  { %v2669_v1 = vpop.f32.mrb[24].mxu0 }
 0x127   :  { %v2781_v0 = vpop.f32.mrb[24].mxu1  ;;  %v871_v2 = vsel %vm850_vm0, %v826_v62, %v827_v63  ;;  %v2670_v4 = vpop.f32.mrb[25].mxu0 }
 0x128   :  { %v2782_v3 = vpop.f32.mrb[25].mxu1  ;;  %v3725_v6 = vadd.f32 %v2665_v56, %v871_v2  ;;  %v2671_v8 = vadd.f32 %v2670_v4, %v2669_v1  ;;  %v2672_v10 = vpop.f32.mrb[26].mxu0 }
 0x129   :  { %v2783_v7 = vadd.f32 %v2782_v3, %v2781_v0  ;;  %v2784_v9 = vpop.f32.mrb[26].mxu1  ;;  %v2673_v12 = vpop.f32.mrb[27].mxu0 }
 0x12a   :  { %v2785_v11 = vpop.f32.mrb[27].mxu1 }
 0x12b   :  { %v2786_v13 = vadd.f32 %v2785_v11, %v2784_v9  ;;  %v828_v14 = vrot.slane %v2783_v7, 1 }
 0x12d   :  { %v829_v15 = vrot.slane %v2786_v13, 1 }
 0x12e   :  { %v2675_v17 = vpop.f32.mrb[28].mxu0 }
 0x12f   :  { %v2787_v16 = vpop.f32.mrb[28].mxu1  ;;  %v869_v18 = vsel %vm850_vm0, %v828_v14, %v829_v15  ;;  %v2676_v21 = vpop.f32.mrb[29].mxu0 }
 0x130   :  { %v2788_v19 = vpop.f32.mrb[29].mxu1  ;;  %v3729_v22 = vadd.f32 %v2671_v8, %v869_v18  ;;  %v2677_v24 = vadd.f32 %v2676_v21, %v2675_v17  ;;  %v2678_v26 = vpop.f32.mrb[30].mxu0 }
 0x131   :  { %v2789_v23 = vadd.f32 %v2788_v19, %v2787_v16  ;;  %v2790_v25 = vpop.f32.mrb[30].mxu1  ;;  %v2679_v28 = vpop.f32.mrb[31].mxu0 }
 0x132   :  { %v2791_v27 = vpop.f32.mrb[31].mxu1 }
 0x133   :  { %v2792_v29 = vadd.f32 %v2791_v27, %v2790_v25  ;;  %v830_v30 = vrot.slane %v2789_v23, 1 }
 0x135   :  { %v831_v32 = vrot.slane %v2792_v29, 1 }
 0x136   :  { %v2681_v34 = vpop.f32.mrb[32].mxu0 }
 0x137   :  { %v2793_v33 = vpop.f32.mrb[32].mxu1  ;;  %v867_v35 = vsel %vm850_vm0, %v830_v30, %v831_v32  ;;  %v2682_v37 = vpop.f32.mrb[33].mxu0 }
 0x138   :  { %v2794_v36 = vpop.f32.mrb[33].mxu1  ;;  %v3733_v40 = vadd.f32 %v2677_v24, %v867_v35  ;;  %v2683_v31 = vadd.f32 %v2682_v37, %v2681_v34  ;;  %v2684_v43 = vpop.f32.mrb[34].mxu0 }
 0x139   :  { %v2795_v41 = vadd.f32 %v2794_v36, %v2793_v33  ;;  %v2796_v42 = vpop.f32.mrb[34].mxu1  ;;  %v2685_v45 = vpop.f32.mrb[35].mxu0 }
 0x13a   :  { %v2797_v44 = vpop.f32.mrb[35].mxu1 }
 0x13b   :  { %v2798_v46 = vadd.f32 %v2797_v44, %v2796_v42  ;;  %v832_v47 = vrot.slane %v2795_v41, 1 }
 0x13d   :  { %v833_v48 = vrot.slane %v2798_v46, 1 }
 0x13e   :  { %v2687_v50 = vpop.f32.mrb[36].mxu0 }
 0x13f   :  { %v2799_v49 = vpop.f32.mrb[36].mxu1  ;;  %v865_v51 = vsel %vm850_vm0, %v832_v47, %v833_v48  ;;  %v2688_v55 = vpop.f32.mrb[37].mxu0 }
 0x140   :  { %v2800_v52 = vpop.f32.mrb[37].mxu1  ;;  %v3737_v56 = vadd.f32 %v2683_v31, %v865_v51  ;;  %v2689_v58 = vadd.f32 %v2688_v55, %v2687_v50  ;;  %v2690_v60 = vpop.f32.mrb[38].mxu0 }
 0x141   :  { %v2801_v57 = vadd.f32 %v2800_v52, %v2799_v49  ;;  %v2802_v59 = vpop.f32.mrb[38].mxu1  ;;  %v2691_v62 = vpop.f32.mrb[39].mxu0 }
 0x142   :  { %v2803_v61 = vpop.f32.mrb[39].mxu1 }
 0x143   :  { %v2804_v63 = vadd.f32 %v2803_v61, %v2802_v59  ;;  %v834_v0 = vrot.slane %v2801_v57, 1 }
 0x145   :  { %v835_v1 = vrot.slane %v2804_v63, 1 }
 0x146   :  { %v2693_v3 = vpop.f32.mrb[40].mxu0 }
 0x147   :  { %v2805_v2 = vpop.f32.mrb[40].mxu1  ;;  %v863_v4 = vsel %vm850_vm0, %v834_v0, %v835_v1  ;;  %v2694_v8 = vpop.f32.mrb[41].mxu0 }
 0x148   :  { %v2806_v7 = vpop.f32.mrb[41].mxu1  ;;  %v3741_v9 = vadd.f32 %v2689_v58, %v863_v4  ;;  %v2695_v11 = vadd.f32 %v2694_v8, %v2693_v3  ;;  %v2696_v13 = vpop.f32.mrb[42].mxu0 }
 0x149   :  { %v2807_v10 = vadd.f32 %v2806_v7, %v2805_v2  ;;  %v2808_v12 = vpop.f32.mrb[42].mxu1  ;;  %v2697_v15 = vpop.f32.mrb[43].mxu0 }
 0x14a   :  { %v2809_v14 = vpop.f32.mrb[43].mxu1 }
 0x14b   :  { %v2810_v16 = vadd.f32 %v2809_v14, %v2808_v12  ;;  %v836_v17 = vrot.slane %v2807_v10, 1 }
 0x14d   :  { %v837_v18 = vrot.slane %v2810_v16, 1 }
 0x14e   :  { %v2699_v21 = vpop.f32.mrb[44].mxu0 }
 0x14f   :  { %v2811_v19 = vpop.f32.mrb[44].mxu1  ;;  %v861_v23 = vsel %vm850_vm0, %v836_v17, %v837_v18  ;;  %v2700_v25 = vpop.f32.mrb[45].mxu0 }
 0x150   :  { %v2812_v24 = vpop.f32.mrb[45].mxu1  ;;  %v3745_v26 = vadd.f32 %v2695_v11, %v861_v23  ;;  %v2701_v28 = vadd.f32 %v2700_v25, %v2699_v21  ;;  %v2702_v30 = vpop.f32.mrb[46].mxu0 }
 0x151   :  { %v2813_v27 = vadd.f32 %v2812_v24, %v2811_v19  ;;  %v2814_v29 = vpop.f32.mrb[46].mxu1  ;;  %v2703_v33 = vpop.f32.mrb[47].mxu0 }
 0x152   :  { %v2815_v32 = vpop.f32.mrb[47].mxu1 }
 0x153   :  { %v2816_v34 = vadd.f32 %v2815_v32, %v2814_v29  ;;  %v838_v35 = vrot.slane %v2813_v27, 1 }
 0x155   :  { %v839_v36 = vrot.slane %v2816_v34, 1 }
 0x156   :  { %v2705_v41 = vpop.f32.mrb[48].mxu0 }
 0x157   :  { %v2817_v37 = vpop.f32.mrb[48].mxu1  ;;  %v859_v31 = vsel %vm850_vm0, %v838_v35, %v839_v36  ;;  %v2706_v43 = vpop.f32.mrb[49].mxu0 }
 0x158   :  { %v2818_v42 = vpop.f32.mrb[49].mxu1  ;;  %v3749_v44 = vadd.f32 %v2701_v28, %v859_v31  ;;  %v2707_v46 = vadd.f32 %v2706_v43, %v2705_v41  ;;  %v2708_v48 = vpop.f32.mrb[50].mxu0 }
 0x159   :  { %v2819_v45 = vadd.f32 %v2818_v42, %v2817_v37  ;;  %v2820_v47 = vpop.f32.mrb[50].mxu1  ;;  %v2709_v50 = vpop.f32.mrb[51].mxu0 }
 0x15a   :  { %v2821_v49 = vpop.f32.mrb[51].mxu1 }
 0x15b   :  { %v2822_v51 = vadd.f32 %v2821_v49, %v2820_v47  ;;  %v840_v52 = vrot.slane %v2819_v45, 1 }
 0x15d   :  { %v841_v55 = vrot.slane %v2822_v51, 1 }
 0x15e   :  { %v2711_v58 = vpop.f32.mrb[52].mxu0 }
 0x15f   :  { %v2823_v57 = vpop.f32.mrb[52].mxu1  ;;  %v857_v59 = vsel %vm850_vm0, %v840_v52, %v841_v55  ;;  %v2712_v61 = vpop.f32.mrb[53].mxu0 }
 0x160   :  { %v2824_v60 = vpop.f32.mrb[53].mxu1  ;;  %v3753_v62 = vadd.f32 %v2707_v46, %v857_v59  ;;  %v2713_v0 = vadd.f32 %v2712_v61, %v2711_v58  ;;  %v2714_v2 = vpop.f32.mrb[54].mxu0 }
 0x161   :  { %v2825_v63 = vadd.f32 %v2824_v60, %v2823_v57  ;;  %v2826_v1 = vpop.f32.mrb[54].mxu1  ;;  %v2715_v4 = vpop.f32.mrb[55].mxu0 }
 0x162   :  { %v2827_v3 = vpop.f32.mrb[55].mxu1 }
 0x163   :  { %v2828_v7 = vadd.f32 %v2827_v3, %v2826_v1  ;;  %v842_v8 = vrot.slane %v2825_v63, 1 }
 0x165   :  { %v843_v10 = vrot.slane %v2828_v7, 1 }
 0x166   :  { %v2717_v12 = vpop.f32.mrb[56].mxu0 }
 0x167   :  { %v2829_v11 = vpop.f32.mrb[56].mxu1  ;;  %v855_v13 = vsel %vm850_vm0, %v842_v8, %v843_v10  ;;  %v2718_v15 = vpop.f32.mrb[57].mxu0 }
 0x168   :  { %v2830_v14 = vpop.f32.mrb[57].mxu1  ;;  %v3757_v16 = vadd.f32 %v2713_v0, %v855_v13  ;;  %v2719_v18 = vadd.f32 %v2718_v15, %v2717_v12  ;;  %v2720_v21 = vpop.f32.mrb[58].mxu0 }
 0x169   :  { %v2831_v17 = vadd.f32 %v2830_v14, %v2829_v11  ;;  %v2832_v19 = vpop.f32.mrb[58].mxu1  ;;  %v2721_v24 = vpop.f32.mrb[59].mxu0 }
 0x16a   :  { %v2833_v23 = vpop.f32.mrb[59].mxu1 }
 0x16b   :  { %v2834_v25 = vadd.f32 %v2833_v23, %v2832_v19  ;;  %v844_v27 = vrot.slane %v2831_v17, 1 }
 0x16d   :  { %v845_v28 = vrot.slane %v2834_v25, 1 }
 0x16e   :  { %v2723_v30 = vpop.f32.mrb[60].mxu0 }
 0x16f   :  { %v2835_v29 = vpop.f32.mrb[60].mxu1  ;;  %v853_v32 = vsel %vm850_vm0, %v844_v27, %v845_v28  ;;  %v2724_v34 = vpop.f32.mrb[61].mxu0 }
 0x170   :  { %v2836_v33 = vpop.f32.mrb[61].mxu1  ;;  %v3761_v35 = vadd.f32 %v2719_v18, %v853_v32  ;;  %v2725_v37 = vadd.f32 %v2724_v34, %v2723_v30  ;;  %v2726_v31 = vpop.f32.mrb[62].mxu0 }
 0x171   :  { %v2837_v36 = vadd.f32 %v2836_v33, %v2835_v29  ;;  %v2838_v41 = vpop.f32.mrb[62].mxu1  ;;  %v2727_v43 = vpop.f32.mrb[63].mxu0 }
 0x172   :  { %v2839_v42 = vpop.f32.mrb[63].mxu1 }
 0x173   :  { %v2840_v45 = vadd.f32 %v2839_v42, %v2838_v41  ;;  %v846_v46 = vrot.slane %v2837_v36, 1 }
 0x175   :  { %v847_v47 = vrot.slane %v2840_v45, 1 }
 0x176   :  { %v2857_v48 = vpop.f32.mrb[64].mxu0 }
 0x177   :  { %v2969_v49 = vpop.f32.mrb[64].mxu1  ;;  %v851_v50 = vsel %vm850_vm0, %v846_v46, %v847_v47  ;;  %v2858_v51 = vpop.f32.mrb[65].mxu0 }
 0x178   :  { %v2970_v52 = vpop.f32.mrb[65].mxu1  ;;  %v3765_v55 = vadd.f32 %v2725_v37, %v851_v50  ;;  %v2859_v57 = vadd.f32 %v2858_v51, %v2857_v48  ;;  %v2860_v60 = vpop.f32.mrb[66].mxu0 }
 0x179   :  { %v2971_v58 = vadd.f32 %v2970_v52, %v2969_v49  ;;  %v2972_v59 = vpop.f32.mrb[66].mxu1  ;;  %v2861_v63 = vpop.f32.mrb[67].mxu0 }
 0x17a   :  { %v2973_v61 = vpop.f32.mrb[67].mxu1  ;;  %v1494_v0 = vadd.f32 %v2859_v57, %v3689_v54 }
 0x17b   :  { %v2974_v1 = vadd.f32 %v2973_v61, %v2972_v59  ;;  %v1848_v2 = vrot.slane %v2971_v58, 1 }
 0x17d   :  { %v1849_v3 = vrot.slane %v2974_v1, 1 }
 0x17e   :  { %v2863_v7 = vpop.f32.mrb[68].mxu0 }
 0x17f   :  { %v1910_v4 = vsel %vm850_vm0, %v1848_v2, %v1849_v3  ;;  %v2975_v8 = vpop.f32.mrb[68].mxu1  ;;  %v2864_v11 = vpop.f32.mrb[69].mxu0 }
 0x180   :  { %v3770_v10 = vadd.f32 %v1910_v4, %v1494_v0  ;;  %v2976_v12 = vpop.f32.mrb[69].mxu1  ;;  %v2865_v13 = vadd.f32 %v2864_v11, %v2863_v7  ;;  %v2866_v17 = vpop.f32.mrb[70].mxu0 }
 0x181   :  { %v2977_v14 = vadd.f32 %v2976_v12, %v2975_v8  ;;  %v2978_v15 = vpop.f32.mrb[70].mxu1  ;;  %v2867_v19 = vpop.f32.mrb[71].mxu0 }
 0x182   :  { %v2979_v18 = vpop.f32.mrb[71].mxu1  ;;  %v1496_v54 = vadd.f32 %v2865_v13, %v3697_v5  ;;  %v2052_v41 = vmul.f32 %v3770_v10, %v3770_v10 }
 0x183   :  { %v2980_v21 = vadd.f32 %v2979_v18, %v2978_v15  ;;  %v1850_v23 = vrot.slane %v2977_v14, 1 }
 0x185   :  { %v1851_v24 = vrot.slane %v2980_v21, 1 }
 0x186   :  { %v2869_v27 = vpop.f32.mrb[72].mxu0 }
 0x187   :  { %v1908_v25 = vsel %vm850_vm0, %v1850_v23, %v1851_v24  ;;  %v2981_v28 = vpop.f32.mrb[72].mxu1  ;;  %v2870_v30 = vpop.f32.mrb[73].mxu0 }
 0x188   :  { %v3775_v29 = vadd.f32 %v1908_v25, %v1496_v54  ;;  %v2982_v32 = vpop.f32.mrb[73].mxu1  ;;  %v2871_v33 = vadd.f32 %v2870_v30, %v2869_v27  ;;  %v2872_v37 = vpop.f32.mrb[74].mxu0 }
 0x189   :  { %v2983_v34 = vadd.f32 %v2982_v32, %v2981_v28  ;;  %v2984_v36 = vpop.f32.mrb[74].mxu1  ;;  %v2873_v43 = vpop.f32.mrb[75].mxu0 }
 0x18a   :  { %v2024_v5 = vadd.f32 %v3775_v29, %v3770_v10  ;;  %v2053_v31 = vmul.f32 %v3775_v29, %v3775_v29  ;;  %v2985_v42 = vpop.f32.mrb[75].mxu1  ;;  %v1498_v45 = vadd.f32 %v2871_v33, %v3705_v20 }
 0x18b   :  { %v2986_v46 = vadd.f32 %v2985_v42, %v2984_v36  ;;  %v1852_v48 = vrot.slane %v2983_v34, 1 }
 0x18c   :  { %v2068_v47 = vadd.f32 %v2053_v31, %v2052_v41 }
 0x18d   :  { %v1853_v49 = vrot.slane %v2986_v46, 1 }
 0x18e   :  { %v2875_v51 = vpop.f32.mrb[76].mxu0 }
 0x18f   :  { %v1906_v50 = vsel %vm850_vm0, %v1852_v48, %v1853_v49  ;;  %v2987_v52 = vpop.f32.mrb[76].mxu1  ;;  %v2876_v58 = vpop.f32.mrb[77].mxu0 }
 0x190   :  { %v3786_v57 = vadd.f32 %v1906_v50, %v1498_v45  ;;  %v2988_v59 = vpop.f32.mrb[77].mxu1  ;;  %v2877_v60 = vadd.f32 %v2876_v58, %v2875_v51  ;;  %v2878_v0 = vpop.f32.mrb[78].mxu0 }
 0x191   :  { %v2989_v61 = vadd.f32 %v2988_v59, %v2987_v52  ;;  %v2990_v63 = vpop.f32.mrb[78].mxu1  ;;  %v2879_v3 = vpop.f32.mrb[79].mxu0 }
 0x192   :  { %v2025_v1 = vadd.f32 %v2024_v5, %v3786_v57  ;;  %v2054_v20 = vmul.f32 %v3786_v57, %v3786_v57  ;;  %v2991_v2 = vpop.f32.mrb[79].mxu1  ;;  %v1500_v4 = vadd.f32 %v2877_v60, %v3717_v38 }
 0x193   :  { %v2992_v7 = vadd.f32 %v2991_v2, %v2990_v63  ;;  %v1854_v11 = vrot.slane %v2989_v61, 1 }
 0x194   :  { %v2069_v8 = vadd.f32 %v2068_v47, %v2054_v20 }
 0x195   :  { %v1855_v12 = vrot.slane %v2992_v7, 1 }
 0x196   :  { %v2881_v14 = vpop.f32.mrb[80].mxu0 }
 0x197   :  { %v1904_v13 = vsel %vm850_vm0, %v1854_v11, %v1855_v12  ;;  %v2993_v15 = vpop.f32.mrb[80].mxu1  ;;  %v2882_v18 = vpop.f32.mrb[81].mxu0 }
 0x198   :  { %v3794_v17 = vadd.f32 %v1904_v13, %v1500_v4  ;;  %v2994_v19 = vpop.f32.mrb[81].mxu1  ;;  %v2883_v54 = vadd.f32 %v2882_v18, %v2881_v14  ;;  %v2884_v24 = vpop.f32.mrb[82].mxu0 }
 0x199   :  { %v2995_v21 = vadd.f32 %v2994_v19, %v2993_v15  ;;  %v2996_v23 = vpop.f32.mrb[82].mxu1  ;;  %v2885_v28 = vpop.f32.mrb[83].mxu0 }
 0x19a   :  { %v2026_v25 = vadd.f32 %v2025_v1, %v3794_v17  ;;  %v2055_v38 = vmul.f32 %v3794_v17, %v3794_v17  ;;  %v2997_v27 = vpop.f32.mrb[83].mxu1  ;;  %v1502_v30 = vadd.f32 %v2883_v54, %v3721_v53 }
 0x19b   :  { %v2998_v32 = vadd.f32 %v2997_v27, %v2996_v23  ;;  %v1856_v34 = vrot.slane %v2995_v21, 1 }
 0x19c   :  { %v2070_v33 = vadd.f32 %v2069_v8, %v2055_v38 }
 0x19d   :  { %v1857_v36 = vrot.slane %v2998_v32, 1 }
 0x19e   :  { %v2887_v41 = vpop.f32.mrb[84].mxu0 }
 0x19f   :  { %v1902_v37 = vsel %vm850_vm0, %v1856_v34, %v1857_v36  ;;  %v2999_v5 = vpop.f32.mrb[84].mxu1  ;;  %v2888_v42 = vpop.f32.mrb[85].mxu0 }
 0x1a0   :  { %v3802_v31 = vadd.f32 %v1902_v37, %v1502_v30  ;;  %v3000_v43 = vpop.f32.mrb[85].mxu1  ;;  %v2889_v45 = vadd.f32 %v2888_v42, %v2887_v41  ;;  %v2890_v48 = vpop.f32.mrb[86].mxu0 }
 0x1a1   :  { %v3001_v46 = vadd.f32 %v3000_v43, %v2999_v5  ;;  %v3002_v47 = vpop.f32.mrb[86].mxu1  ;;  %v2891_v51 = vpop.f32.mrb[87].mxu0 }
 0x1a2   :  { %v2027_v49 = vadd.f32 %v2026_v25, %v3802_v31  ;;  %v2056_v53 = vmul.f32 %v3802_v31, %v3802_v31  ;;  %v3003_v50 = vpop.f32.mrb[87].mxu1  ;;  %v1504_v52 = vadd.f32 %v2889_v45, %v3725_v6 }
 0x1a3   :  { %v3004_v58 = vadd.f32 %v3003_v50, %v3002_v47  ;;  %v1858_v60 = vrot.slane %v3001_v46, 1 }
 0x1a4   :  { %v2071_v59 = vadd.f32 %v2070_v33, %v2056_v53 }
 0x1a5   :  { %v1859_v61 = vrot.slane %v3004_v58, 1 }
 0x1a6   :  { %v2893_v0 = vpop.f32.mrb[88].mxu0 }
 0x1a7   :  { %v1900_v63 = vsel %vm850_vm0, %v1858_v60, %v1859_v61  ;;  %v3005_v1 = vpop.f32.mrb[88].mxu1  ;;  %v2894_v2 = vpop.f32.mrb[89].mxu0 }
 0x1a8   :  { %v3810_v20 = vadd.f32 %v1900_v63, %v1504_v52  ;;  %v3006_v3 = vpop.f32.mrb[89].mxu1  ;;  %v2895_v4 = vadd.f32 %v2894_v2, %v2893_v0  ;;  %v2896_v11 = vpop.f32.mrb[90].mxu0 }
 0x1a9   :  { %v3007_v7 = vadd.f32 %v3006_v3, %v3005_v1  ;;  %v3008_v8 = vpop.f32.mrb[90].mxu1  ;;  %v2897_v14 = vpop.f32.mrb[91].mxu0 }
 0x1aa   :  { %v2028_v12 = vadd.f32 %v2027_v49, %v3810_v20  ;;  %v2057_v6 = vmul.f32 %v3810_v20, %v3810_v20  ;;  %v3009_v13 = vpop.f32.mrb[91].mxu1  ;;  %v1506_v15 = vadd.f32 %v2895_v4, %v3729_v22 }
 0x1ab   :  { %v3010_v18 = vadd.f32 %v3009_v13, %v3008_v8  ;;  %v1860_v54 = vrot.slane %v3007_v7, 1 }
 0x1ac   :  { %v2072_v19 = vadd.f32 %v2071_v59, %v2057_v6 }
 0x1ad   :  { %v1861_v21 = vrot.slane %v3010_v18, 1 }
 0x1ae   :  { %v2899_v24 = vpop.f32.mrb[92].mxu0 }
 0x1af   :  { %v1898_v23 = vsel %vm850_vm0, %v1860_v54, %v1861_v21  ;;  %v3011_v25 = vpop.f32.mrb[92].mxu1  ;;  %v2900_v27 = vpop.f32.mrb[93].mxu0 }
 0x1b0   :  { %v3818_v38 = vadd.f32 %v1898_v23, %v1506_v15  ;;  %v3012_v28 = vpop.f32.mrb[93].mxu1  ;;  %v2901_v30 = vadd.f32 %v2900_v27, %v2899_v24  ;;  %v2902_v34 = vpop.f32.mrb[94].mxu0 }
 0x1b1   :  { %v3013_v32 = vadd.f32 %v3012_v28, %v3011_v25  ;;  %v3014_v33 = vpop.f32.mrb[94].mxu1  ;;  %v2903_v41 = vpop.f32.mrb[95].mxu0 }
 0x1b2   :  { %v2029_v36 = vadd.f32 %v2028_v12, %v3818_v38  ;;  %v2058_v22 = vmul.f32 %v3818_v38, %v3818_v38  ;;  %v3015_v37 = vpop.f32.mrb[95].mxu1  ;;  %v1508_v5 = vadd.f32 %v2901_v30, %v3733_v40 }
 0x1b3   :  { %v3016_v42 = vadd.f32 %v3015_v37, %v3014_v33  ;;  %v1862_v45 = vrot.slane %v3013_v32, 1 }
 0x1b4   :  { %v2073_v43 = vadd.f32 %v2072_v19, %v2058_v22 }
 0x1b5   :  { %v1863_v46 = vrot.slane %v3016_v42, 1 }
 0x1b6   :  { %v2905_v48 = vpop.f32.mrb[96].mxu0 }
 0x1b7   :  { %v1896_v47 = vsel %vm850_vm0, %v1862_v45, %v1863_v46  ;;  %v3017_v49 = vpop.f32.mrb[96].mxu1  ;;  %v2906_v50 = vpop.f32.mrb[97].mxu0 }
 0x1b8   :  { %v3826_v53 = vadd.f32 %v1896_v47, %v1508_v5  ;;  %v3018_v51 = vpop.f32.mrb[97].mxu1  ;;  %v2907_v52 = vadd.f32 %v2906_v50, %v2905_v48  ;;  %v2908_v60 = vpop.f32.mrb[98].mxu0 }
 0x1b9   :  { %v3019_v58 = vadd.f32 %v3018_v51, %v3017_v49  ;;  %v3020_v59 = vpop.f32.mrb[98].mxu1  ;;  %v2909_v0 = vpop.f32.mrb[99].mxu0 }
 0x1ba   :  { %v2030_v61 = vadd.f32 %v2029_v36, %v3826_v53  ;;  %v2059_v40 = vmul.f32 %v3826_v53, %v3826_v53  ;;  %v3021_v63 = vpop.f32.mrb[99].mxu1  ;;  %v1510_v1 = vadd.f32 %v2907_v52, %v3737_v56 }
 0x1bb   :  { %v3022_v2 = vadd.f32 %v3021_v63, %v3020_v59  ;;  %v1864_v7 = vrot.slane %v3019_v58, 1 }
 0x1bc   :  { %v2031_v3 = vrot.slane %v2030_v61, 4  ;;  %v2074_v4 = vadd.f32 %v2073_v43, %v2059_v40 }
 0x1bd   :  { %v1865_v8 = vrot.slane %v3022_v2, 1 }
 0x1be   :  { %v2032_v11 = vadd.f32 %v2031_v3, %v2030_v61  ;;  %v2075_v12 = vrot.slane %v2074_v4, 4  ;;  %v2911_v13 = vpop.f32.mrb[100].mxu0 }
 0x1bf   :  { %v1894_v6 = vsel %vm850_vm0, %v1864_v7, %v1865_v8  ;;  %v3023_v14 = vpop.f32.mrb[100].mxu1  ;;  %v2912_v54 = vpop.f32.mrb[101].mxu0 }
 0x1c0   :  { %v2033_v15 = vrot.slane %v2032_v11, 2  ;;  %v2076_v18 = vadd.f32 %v2075_v12, %v2074_v4  ;;  %v3834_v19 = vadd.f32 %v1894_v6, %v1510_v1  ;;  %v3024_v21 = vpop.f32.mrb[101].mxu1  ;;  %v2913_v23 = vadd.f32 %v2912_v54, %v2911_v13  ;;  %v2914_v25 = vpop.f32.mrb[102].mxu0 }
 0x1c1   :  { %v3025_v56 = vadd.f32 %v3024_v21, %v3023_v14  ;;  %v3026_v24 = vpop.f32.mrb[102].mxu1  ;;  %v2915_v32 = vpop.f32.mrb[103].mxu0 }
 0x1c2   :  { %v2034_v27 = vadd.f32 %v2033_v15, %v2032_v11  ;;  %v2077_v28 = vrot.slane %v2076_v18, 2  ;;  %v3027_v30 = vpop.f32.mrb[103].mxu1  ;;  %v1512_v33 = vadd.f32 %v2913_v23, %v3741_v9  ;;  %v2060_v2 = vmul.f32 %v3834_v19, %v3834_v19 }
 0x1c3   :  { %v3028_v34 = vadd.f32 %v3027_v30, %v3026_v24  ;;  %v1866_v37 = vrot.slane %v3025_v56, 1 }
 0x1c4   :  { %v2035_v36 = vrot.slane %v2034_v27, 1  ;;  %v2078_v22 = vadd.f32 %v2077_v28, %v2076_v18 }
 0x1c5   :  { %v1867_v41 = vrot.slane %v3028_v34, 1 }
 0x1c6   :  { %v2036_v5 = vadd.f32 %v2035_v36, %v2034_v27  ;;  %v2079_v42 = vrot.slane %v2078_v22, 1  ;;  %v2917_v45 = vpop.f32.mrb[104].mxu0 }
 0x1c7   :  { %v1892_v43 = vsel %vm850_vm0, %v1866_v37, %v1867_v41  ;;  %v3029_v46 = vpop.f32.mrb[104].mxu1  ;;  %v2918_v50 = vpop.f32.mrb[105].mxu0 }
 0x1c8   :  { %v3839_v47 = vmul.f32 0.015625, %v2036_v5  ;;  %v2080_v48 = vadd.f32 %v2079_v42, %v2078_v22  ;;  %v3841_v49 = vadd.f32 %v1892_v43, %v1512_v33  ;;  %v3030_v51 = vpop.f32.mrb[105].mxu1  ;;  %v2919_v9 = vadd.f32 %v2918_v50, %v2917_v45  ;;  %v2920_v59 = vpop.f32.mrb[106].mxu0 }
 0x1c9   :  { %v3031_v52 = vadd.f32 %v3030_v51, %v3029_v46  ;;  %v3032_v58 = vpop.f32.mrb[106].mxu1  ;;  %v2921_v1 = vpop.f32.mrb[107].mxu0 }
 0x1ca   :  { %v2094_v60 = vmul.f32 0.015625, %v2080_v48  ;;  %v2096_v61 = vmul.f32 %v3839_v47, %v3839_v47  ;;  %v2106_v40 = vsub.f32 %v3818_v38, %v3839_v47  ;;  %v2107_v63 = vsub.f32 %v3826_v53, %v3839_v47  ;;  %v3033_v0 = vpop.f32.mrb[107].mxu1 }
 0x1cb   :  { %v2037_v3 = vadd.f32 %v3841_v49, %v3834_v19  ;;  %v2061_v4 = vmul.f32 %v3841_v49, %v3841_v49  ;;  %v1514_v7 = vadd.f32 %v2919_v9, %v3745_v26  ;;  %v3034_v11 = vadd.f32 %v3033_v0, %v3032_v58 }
 0x1cc   :  { %v2098_v8 = vsub.f32 %v2094_v60, %v2096_v61  ;;  %v2100_v38 = vsub.f32 %v3770_v10, %v3839_v47  ;;  %v2101_v53 = vsub.f32 %v3775_v29, %v3839_v47  ;;  %v2102_v6 = vsub.f32 %v3786_v57, %v3839_v47 }
 0x1cd   :  { %v2081_v12 = vadd.f32 %v2061_v4, %v2060_v2  ;;  %v2103_v13 = vsub.f32 %v3794_v17, %v3839_v47  ;;  %v2104_v14 = vsub.f32 %v3802_v31, %v3839_v47  ;;  %v1868_v26 = vrot.slane %v3031_v52, 1 }
 0x1ce   :  { %v2116_v15 = vmax.f32 %v2098_v8, 0.0  ;;  %v1869_v18 = vrot.slane %v3034_v11, 1  ;;  %v2105_v54 = vsub.f32 %v3810_v20, %v3839_v47  ;;  %v2923_v10 = vpop.f32.mrb[108].mxu0 }
 0x1cf   :  { %v3035_v21 = vpop.f32.mrb[108].mxu1  ;;  %v2924_v56 = vpop.f32.mrb[109].mxu0 }
 0x1d0   :  { %v2118_v23 = vadd.f32 1e-05, %v2116_v15  ;;  %v1890_v29 = vsel %vm850_vm0, %v1868_v26, %v1869_v18  ;;  %v3036_v57 = vpop.f32.mrb[109].mxu1  ;;  %v2925_v17 = vadd.f32 %v2924_v56, %v2923_v10  ;;  %v2926_v31 = vpop.f32.mrb[110].mxu0 }
 0x1d1   :  { %v3870_v24 = vadd.f32 %v1890_v29, %v1514_v7  ;;  %v3037_v25 = vadd.f32 %v3036_v57, %v3035_v21  ;;  %v3038_v27 = vpop.f32.mrb[110].mxu1  ;;  %v2927_v30 = vpop.f32.mrb[111].mxu0 }
 0x1d2   :  { %3186 = vrsqrt.f32 %v2118_v23  ;;  %v3039_v28 = vpop.f32.mrb[111].mxu1  ;;  %v1516_v33 = vadd.f32 %v2925_v17, %v3749_v44 }
 0x1d3   :  { %v2038_v32 = vadd.f32 %v2037_v3, %v3870_v24  ;;  %v2062_v20 = vmul.f32 %v3870_v24, %v3870_v24  ;;  %v3040_v34 = vadd.f32 %v3039_v28, %v3038_v27  ;;  %v1870_v22 = vrot.slane %v3037_v25, 1 }
 0x1d5   :  { %v2082_v36 = vadd.f32 %v2081_v12, %v2062_v20  ;;  %v1871_v37 = vrot.slane %v3040_v34, 1 }
 0x1d6   :  { %v2929_v41 = vpop.f32.mrb[112].mxu0 }
 0x1d7   :  { %v3041_v5 = vpop.f32.mrb[112].mxu1  ;;  %v1888_v42 = vsel %vm850_vm0, %v1870_v22, %v1871_v37  ;;  %v2930_v43 = vpop.f32.mrb[113].mxu0 }
 0x1d8   :  { %v3042_v45 = vpop.f32.mrb[113].mxu1  ;;  %v3878_v46 = vadd.f32 %v1888_v42, %v1516_v33  ;;  %v2931_v47 = vadd.f32 %v2930_v43, %v2929_v41  ;;  %v2932_v51 = vpop.f32.mrb[114].mxu0 }
 0x1d9   :  { %v3043_v48 = vadd.f32 %v3042_v45, %v3041_v5  ;;  %v3044_v50 = vpop.f32.mrb[114].mxu1  ;;  %v2933_v52 = vpop.f32.mrb[115].mxu0 }
 0x1da   :  { %v3045_v9 = vpop.f32.mrb[115].mxu1  ;;  %v2039_v44 = vadd.f32 %v2038_v32, %v3878_v46  ;;  %v2063_v58 = vmul.f32 %v3878_v46, %v3878_v46  ;;  %v1518_v59 = vadd.f32 %v2931_v47, %v3753_v62 }
 0x1db   :  { %v1872_v61 = vrot.slane %v3043_v48, 1  ;;  %v3046_v0 = vadd.f32 %v3045_v9, %v3044_v50 }
 0x1dc   :  { %v3187_v60 = vpop.eup %3186  ;;  %v2083_v3 = vadd.f32 %v2082_v36, %v2063_v58 }
 0x1dd   :  { %v2128_v1 = vmul.f32 %v3187_v60, %v2106_v40  ;;  %v2129_v2 = vmul.f32 %v3187_v60, %v2107_v63  ;;  %v2122_v4 = vmul.f32 %v3187_v60, %v2100_v38  ;;  %v1873_v7 = vrot.slane %v3046_v0, 1 }
 0x1de   :  { %v2123_v8 = vmul.f32 %v3187_v60, %v2101_v53  ;;  %v2124_v11 = vmul.f32 %v3187_v60, %v2102_v6  ;;  %v2125_v12 = vmul.f32 %v3187_v60, %v2103_v13  ;;  %v2935_v10 = vpop.f32.mrb[116].mxu0  ;;  %v2126_v21 = vmul.f32 %v3187_v60, %v2104_v14 }
 0x1df   :  { %vm2144_vm1 = vcmp.gt.f32.partialorder %v2128_v1, 0.0  ;;  %vm2145_vm2 = vcmp.gt.f32.partialorder %v2129_v2, 0.0  ;;  %v2160_v15 = vmul.f32 0.2, %v2128_v1  ;;  %v2161_v26 = vmul.f32 0.2, %v2129_v2 }
 0x1e0   :  { %v1886_v18 = vsel %vm850_vm0, %v1872_v61, %v1873_v7  ;;  %v3047_v62 = vpop.f32.mrb[116].mxu1  ;;  %v2127_v23 = vmul.f32 %v3187_v60, %v2105_v54  ;;  %v2936_v38 = vpop.f32.mrb[117].mxu0  ;;  %vm2138_vm3 = vcmp.gt.f32.partialorder %v2122_v4, 0.0  ;;  %vm2139_vm4 = vcmp.gt.f32.partialorder %v2123_v8, 0.0 }
 0x1e1   :  { %v2176_v29 = vsel %vm2144_vm1, %v2128_v1, %v2160_v15  ;;  %v2177_v40 = vsel %vm2145_vm2, %v2129_v2, %v2161_v26  ;;  %v3886_v63 = vadd.f32 %v1886_v18, %v1518_v59  ;;  %v3048_v56 = vpop.f32.mrb[117].mxu1  ;;  %v2937_v6 = vadd.f32 %v2936_v38, %v2935_v10  ;;  %v2938_v17 = vpop.f32.mrb[118].mxu0 }
 0x1e2   :  { %v2588_v53 = vpack.c.bf16 %v2177_v40, %v2176_v29  ;;  %v3049_v13 = vadd.f32 %v3048_v56, %v3047_v62  ;;  %v3050_v57 = vpop.f32.mrb[118].mxu1  ;;  %v2939_v54 = vpop.f32.mrb[119].mxu0  ;;  %vm2140_vm5 = vcmp.gt.f32.partialorder %v2124_v11, 0.0  ;;  %vm2141_vm6 = vcmp.gt.f32.partialorder %v2125_v12, 0.0 }
 0x1e3   :  { %v2040_v25 = vadd.f32 %v2039_v44, %v3886_v63  ;;  %v2064_v27 = vmul.f32 %v3886_v63, %v3886_v63  ;;  %v3051_v14 = vpop.f32.mrb[119].mxu1  ;;  %v1520_v31 = vadd.f32 %v2937_v6, %v3757_v16  ;;  %vm2142_vm7 = vcmp.gt.f32.partialorder %v2126_v21, 0.0 }
 0x1e4   :  { %2612 = vst [vmem:[#allocation3 + $0x18] sm:$0xff] %v2588_v53   ;;  %v1874_v28 = vrot.slane %v3049_v13, 1  ;;  %v3052_v30 = vadd.f32 %v3051_v14, %v3050_v57  ;;  %v2154_v20 = vmul.f32 0.2, %v2122_v4  ;;  %v2155_v33 = vmul.f32 0.2, %v2123_v8 }
 0x1e5   :  { %v2084_v32 = vadd.f32 %v2083_v3, %v2064_v27  ;;  %v2156_v34 = vmul.f32 0.2, %v2124_v11  ;;  %vm2143_vm8 = vcmp.gt.f32.partialorder %v2127_v23, 0.0  ;;  %v2157_v22 = vmul.f32 0.2, %v2125_v12 }
 0x1e6   :  { %v1875_v36 = vrot.slane %v3052_v30, 1  ;;  %v2158_v37 = vmul.f32 0.2, %v2126_v21  ;;  %v2941_v41 = vpop.f32.mrb[120].mxu0  ;;  %v2159_v42 = vmul.f32 0.2, %v2127_v23  ;;  %v2170_v43 = vsel %vm2138_vm3, %v2122_v4, %v2154_v20 }
 0x1e7   :  { %v3053_v5 = vpop.f32.mrb[120].mxu1  ;;  %v2171_v45 = vsel %vm2139_vm4, %v2123_v8, %v2155_v33  ;;  %v2172_v16 = vsel %vm2140_vm5, %v2124_v11, %v2156_v34  ;;  %v2942_v48 = vpop.f32.mrb[121].mxu0  ;;  %v2173_v51 = vsel %vm2141_vm6, %v2125_v12, %v2157_v22 }
 0x1e8   :  { %v1884_v47 = vsel %vm850_vm0, %v1874_v28, %v1875_v36  ;;  %v3054_v50 = vpop.f32.mrb[121].mxu1  ;;  %v2174_v9 = vsel %vm2142_vm7, %v2126_v21, %v2158_v37  ;;  %v2573_v52 = vpack.c.bf16 %v2171_v45, %v2170_v43  ;;  %v2943_v58 = vadd.f32 %v2942_v48, %v2941_v41  ;;  %v2944_v61 = vpop.f32.mrb[122].mxu0 }
 0x1e9   :  { %v3899_v44 = vadd.f32 %v1884_v47, %v1520_v31  ;;  %v3055_v59 = vadd.f32 %v3054_v50, %v3053_v5  ;;  %v3056_v60 = vpop.f32.mrb[122].mxu1  ;;  %v2175_v0 = vsel %vm2143_vm8, %v2127_v23, %v2159_v42  ;;  %v2945_v2 = vpop.f32.mrb[123].mxu0  ;;  %v2578_v3 = vpack.c.bf16 %v2173_v51, %v2172_v16 }
 0x1ea   :  { %v3057_v1 = vpop.f32.mrb[123].mxu1  ;;  %2574 = vst [vmem:[#allocation3] sm:$0xff] %v2573_v52   ;;  %v2583_v4 = vpack.c.bf16 %v2175_v0, %v2174_v9  ;;  %v1522_v11 = vadd.f32 %v2943_v58, %v3761_v35 }
 0x1eb   :  { %v2041_v7 = vadd.f32 %v2040_v25, %v3899_v44  ;;  %v2065_v8 = vmul.f32 %v3899_v44, %v3899_v44  ;;  %v3058_v12 = vadd.f32 %v3057_v1, %v3056_v60  ;;  %2610 = vst [vmem:[#allocation3 + $0x8] sm:$0xff] %v2578_v3   ;;  %v1876_v26 = vrot.slane %v3055_v59, 1 }
 0x1ec   :  { %2611 = vst [vmem:[#allocation3 + $0x10] sm:$0xff] %v2583_v4  }
 0x1ed   :  { %v2085_v15 = vadd.f32 %v2084_v32, %v2065_v8  ;;  %v1877_v18 = vrot.slane %v3058_v12, 1 }
 0x1ee   :  { %v2947_v10 = vpop.f32.mrb[124].mxu0 }
 0x1ef   :  { %v3059_v62 = vpop.f32.mrb[124].mxu1  ;;  %v1882_v21 = vsel %vm850_vm0, %v1876_v26, %v1877_v18  ;;  %v2948_v23 = vpop.f32.mrb[125].mxu0 }
 0x1f0   :  { %v3060_v29 = vpop.f32.mrb[125].mxu1  ;;  %v1972_v40 = vadd.f32 %v1882_v21, %v1522_v11  ;;  %v2949_v38 = vadd.f32 %v2948_v23, %v2947_v10  ;;  %v2950_v6 = vpop.f32.mrb[126].mxu0 }
 0x1f1   :  { %v3061_v56 = vadd.f32 %v3060_v29, %v3059_v62  ;;  %v3062_v53 = vpop.f32.mrb[126].mxu1  ;;  %v2951_v35 = vpop.f32.mrb[127].mxu0 }
 0x1f2   :  { %v3063_v13 = vpop.f32.mrb[127].mxu1  ;;  %v2042_v57 = vadd.f32 %v2041_v7, %v1972_v40  ;;  %v2066_v17 = vmul.f32 %v1972_v40, %v1972_v40  ;;  %v1524_v25 = vadd.f32 %v2949_v38, %v3765_v55 }
 0x1f3   :  { %v3064_v27 = vadd.f32 %v3063_v13, %v3062_v53  ;;  %v1878_v54 = vrot.slane %v3061_v56, 1 }
 0x1f4   :  { %v2086_v14 = vadd.f32 %v2085_v15, %v2066_v17 }
 0x1f5   :  { %v1879_v31 = vrot.slane %v3064_v27, 1 }
 0x1f7   :  { %v1880_v28 = vsel %vm850_vm0, %v1878_v54, %v1879_v31 }
 0x1f8   :  { %v1974_v30 = vadd.f32 %v1880_v28, %v1524_v25 }
 0x1fa   :  { %v2043_v32 = vadd.f32 %v2042_v57, %v1974_v30  ;;  %v2067_v20 = vmul.f32 %v1974_v30, %v1974_v30 }
 0x1fc   :  { %v2044_v33 = vrot.slane %v2043_v32, 4  ;;  %v2087_v34 = vadd.f32 %v2086_v14, %v2067_v20 }
 0x1fe   :  { %v2045_v36 = vadd.f32 %v2044_v33, %v2043_v32  ;;  %v2088_v22 = vrot.slane %v2087_v34, 4 }
 0x200   :  { %v2046_v37 = vrot.slane %v2045_v36, 2  ;;  %v2089_v41 = vadd.f32 %v2088_v22, %v2087_v34 }
 0x202   :  { %v2047_v5 = vadd.f32 %v2046_v37, %v2045_v36  ;;  %v2090_v42 = vrot.slane %v2089_v41, 2 }
 0x204   :  { %v2048_v43 = vrot.slane %v2047_v5, 1  ;;  %v2091_v55 = vadd.f32 %v2090_v42, %v2089_v41 }
 0x206   :  { %v2049_v45 = vadd.f32 %v2048_v43, %v2047_v5  ;;  %v2092_v16 = vrot.slane %v2091_v55, 1 }
 0x208   :  { %v2051_v47 = vmul.f32 0.015625, %v2049_v45  ;;  %v2093_v48 = vadd.f32 %v2092_v16, %v2091_v55 }
 0x20a   :  { %v2095_v50 = vmul.f32 0.015625, %v2093_v48  ;;  %v2097_v39 = vmul.f32 %v2051_v47, %v2051_v47  ;;  %v2114_v51 = vsub.f32 %v1972_v40, %v2051_v47  ;;  %v2115_v9 = vsub.f32 %v1974_v30, %v2051_v47 }
 0x20b   :  { %v2108_v52 = vsub.f32 %v3834_v19, %v2051_v47  ;;  %v2109_v58 = vsub.f32 %v3841_v49, %v2051_v47  ;;  %v2110_v59 = vsub.f32 %v3870_v24, %v2051_v47  ;;  %v2111_v60 = vsub.f32 %v3878_v46, %v2051_v47 }
 0x20c   :  { %v2099_v61 = vsub.f32 %v2095_v50, %v2097_v39  ;;  %v2112_v0 = vsub.f32 %v3886_v63, %v2051_v47  ;;  %v2113_v1 = vsub.f32 %v3899_v44, %v2051_v47 }
 0x20e   :  { %v2117_v2 = vmax.f32 %v2099_v61, 0.0 }
 0x210   :  { %v2119_v3 = vadd.f32 1e-05, %v2117_v2 }
 0x212   :  { %3188 = vrsqrt.f32 %v2119_v3 }
 0x21c   :  { %v3189_v4 = vpop.eup %3188 }
 0x21d   :  { %v2136_v7 = vmul.f32 %v3189_v4, %v2114_v51  ;;  %v2137_v8 = vmul.f32 %v3189_v4, %v2115_v9  ;;  %v2130_v11 = vmul.f32 %v3189_v4, %v2108_v52  ;;  %v2131_v12 = vmul.f32 %v3189_v4, %v2109_v58 }
 0x21e   :  { %v2132_v19 = vmul.f32 %v3189_v4, %v2110_v59  ;;  %v2133_v15 = vmul.f32 %v3189_v4, %v2111_v60  ;;  %v2134_v49 = vmul.f32 %v3189_v4, %v2112_v0  ;;  %v2135_v26 = vmul.f32 %v3189_v4, %v2113_v1 }
 0x21f   :  { %vm2152_vm9 = vcmp.gt.f32.partialorder %v2136_v7, 0.0  ;;  %vm2153_vm10 = vcmp.gt.f32.partialorder %v2137_v8, 0.0  ;;  %v2168_v24 = vmul.f32 0.2, %v2136_v7  ;;  %v2169_v46 = vmul.f32 0.2, %v2137_v8 }
 0x220   :  { %vm2146_vm11 = vcmp.gt.f32.partialorder %v2130_v11, 0.0  ;;  %vm2147_vm12 = vcmp.gt.f32.partialorder %v2131_v12, 0.0  ;;  %vm2148_vm13 = vcmp.gt.f32.partialorder %v2132_v19, 0.0  ;;  %vm2149_vm14 = vcmp.gt.f32.partialorder %v2133_v15, 0.0 }
 0x221   :  { %v2184_v63 = vsel %vm2152_vm9, %v2136_v7, %v2168_v24  ;;  %v2185_v44 = vsel %vm2153_vm10, %v2137_v8, %v2169_v46  ;;  %vm2150_vm15 = vcmp.gt.f32.partialorder %v2134_v49, 0.0  ;;  %vm2151_vm0 = vcmp.gt.f32.partialorder %v2135_v26, 0.0 }
 0x222   :  { %v2608_v18 = vpack.c.bf16 %v2185_v44, %v2184_v63  ;;  %v2162_v10 = vmul.f32 0.2, %v2130_v11  ;;  %v2163_v62 = vmul.f32 0.2, %v2131_v12  ;;  %v2164_v21 = vmul.f32 0.2, %v2132_v19 }
 0x223   :  { %v2165_v23 = vmul.f32 0.2, %v2133_v15  ;;  %v2166_v29 = vmul.f32 0.2, %v2134_v49  ;;  %v2167_v40 = vmul.f32 0.2, %v2135_v26 }
 0x224   :  { %2616 = vst [vmem:[#allocation3 + $0x38] sm:$0xff] %v2608_v18   ;;  %v2178_v38 = vsel %vm2146_vm11, %v2130_v11, %v2162_v10  ;;  %v2179_v56 = vsel %vm2147_vm12, %v2131_v12, %v2163_v62  ;;  %v2180_v53 = vsel %vm2148_vm13, %v2132_v19, %v2164_v21 }
 0x225   :  { %v2181_v6 = vsel %vm2149_vm14, %v2133_v15, %v2165_v23  ;;  %v2182_v13 = vsel %vm2150_vm15, %v2134_v49, %v2166_v29  ;;  %v2183_v35 = vsel %vm2151_vm0, %v2135_v26, %v2167_v40  ;;  %v2593_v57 = vpack.c.bf16 %v2179_v56, %v2178_v38 }
 0x226   :  { %v2598_v17 = vpack.c.bf16 %v2181_v6, %v2180_v53  ;;  %v2603_v25 = vpack.c.bf16 %v2183_v35, %v2182_v13 }
 0x227   :  { %2613 = vst [vmem:[#allocation3 + $0x20] sm:$0xff] %v2593_v57  }
 0x228   :  { %2614 = vst [vmem:[#allocation3 + $0x28] sm:$0xff] %v2598_v17   ;;  %2615 = vst [vmem:[#allocation3 + $0x30] sm:$0xff] %v2603_v25  }
 0x229   :  { %3201 = shalt.err (!%p3198_p4)
}
 0x22a   :  { %s3202_s15 = scalar_lea.hbm %s3937_s2, 1024 }
 0x22b   :  { %p3203_p5 = scmp.ne.s32.totalorder %s3937_s2, %s3202_s15  ;;  %p3206_p6 = scmp.lt.u32.totalorder %s3202_s15, %s3937_s2 }
 0x22d   :  { %p3208_p7 = pnand %p3206_p6, %p3203_p5 }
 0x22f   :  { %3211 = shalt.err (!%p3208_p7)
}
 0x230   :  { %s3215_s20 = smov 64   ;;  %s3216_s21 = smov 4  }
 0x231   :  { %2277 = dma.vmem_to_hbm [thread:$0]  %s2272_s11, 1024, %s3937_s2, [#allocation4], %s3215_s20, %s3215_s20, %s3216_s21  }
 0x232   :  { %3212 = dma.done.wait [#allocation4], 1024  }
 0x233   :  { %3213 = vsyncadd [#allocation4], 4294966272 }
 0x234   :  { %2281 = vsyncpa [#allocation4], 1 }

</bundles_post_ra>
